<compile_context>
chip_gen: v5e
topology: v5e:2x2
jax: 0.10.0
libtpu: 0.0.40
codegen_flags: <defaults>
</compile_context>

<pallas_src>
import functools

import jax
import jax.numpy as jnp
from jax import lax
from jax.experimental import pallas as pl
from jax.experimental.pallas import tpu as pltpu


def _vmem_limit_bytes():
    """~3/4 of per-core VMEM (48 MiB on v7x, 96 MiB on v5e/v6e), safe fallback."""
    cap = 0
    try:
        if jax.devices()[0].platform == "tpu":
            cap = int(pltpu.get_tpu_info().vmem_capacity_bytes)
    except Exception:
        cap = 0
    if cap < 32 * 1024 * 1024:           # unknown / interpret host
        cap = 64 * 1024 * 1024           # conservative (v7x per-core VMEM)
    return min((cap * 3) // 4, 112 * 1024 * 1024)


def _round_up(x, m):
    return ((x + m - 1) // m) * m


def _pick_tile_n(n, per_tile_bytes, budget):
    """Largest 128-multiple N-tile under `budget`; prefers big tiles (>=512,
    small padding waste) or exact divisors of the 128-padded N."""
    n128 = max(128, _round_up(n, 128))
    cands = [t for t in (2048, 1024, 512, 256, 128) if t <= n128]
    fitting = [t for t in cands if per_tile_bytes(t) <= budget] or [128]
    for t in fitting:                                   # descending
        if n128 % t == 0 or (t >= 512 and _round_up(n, t) - n128 <= n128 // 8):
            return t, _round_up(n, t)
    t = fitting[0]
    return t, _round_up(n, t)


def _packed_cols(tn, last):
    """Lane-dense packing of a (tn, last) tile -> (tn*last/128, 128) when legal."""
    if last % 128 != 0 and (tn * last) % (8 * 128) == 0:
        return (tn * last) // 128, 128
    return tn, last


# --------------------------------------------------------------------------- #
# Kernel 1: soft k-means codebook init (init_embed_ / soft_kmeans).
# Grid = (h, kmeans_iters, n_tiles).  When the padded x slab fits VMEM the
# N-tile is the whole slab (block index constant across `it` -> no re-DMA);
# running means and the per-iteration accumulators live in VMEM scratch.
# --------------------------------------------------------------------------- #
def _kmeans_kernel(x_ref, minit_ref, embed_ref,
                   means_sc, mmt_sc, msq_sc, bmeans_sc, sizes_sc,
                   *, matmul_dtype, n_valid, tile_n):
    it, ni = pl.program_id(1), pl.program_id(2)
    n_it, n_ni = pl.num_programs(1), pl.num_programs(2)

    def refresh_means(m):
        # Hoisted per means-update (not per N-tile): bf16 cast, pre-transpose
        # to (D, C) so the MXU runs a plain (tn, D) @ (D, C), and ||m||^2.
        means_sc[...] = m
        mmt_sc[...] = m.astype(matmul_dtype).T
        msq_sc[...] = jnp.sum(m * m, axis=-1, keepdims=True).T     # (1, C)

    @pl.when(jnp.logical_and(it == 0, ni == 0))
    def _():
        refresh_means(minit_ref[0])     # torch.randn analogue (host-sampled)

    @pl.when(ni == 0)
    def _():
        bmeans_sc[...] = jnp.zeros_like(bmeans_sc)
        sizes_sc[...] = jnp.zeros_like(sizes_sc)

    x = x_ref[0]                        # (tn, D) f32

    # softmax(-||x-m||^2): the ||x||^2 term is constant per row and cancels in
    # the row softmax, so only 2*x@m^T - ||m||^2 is needed (||m||^2 is cached).
    cross = jnp.dot(x.astype(matmul_dtype), mmt_sc[...],
                    preferred_element_type=jnp.float32)            # (tn, C)
    z = 2.0 * cross - msq_sc[...]
    z = z - jnp.max(z, axis=-1, keepdims=True)
    p = jnp.exp(z)
    assign = p / jnp.sum(p, axis=-1, keepdims=True)                # (tn, C)

    if n_valid is not None:             # static branch: mask padded rows
        row = lax.broadcasted_iota(jnp.int32, assign.shape, 0) + ni * tile_n
        assign = jnp.where(row < n_valid, assign, 0.0)

    # accumulate assign^T @ x (MXU) and cluster sizes (XLU sublane reduce).
    # TODO(synk): check with pl.lower_as_mlir that the dim-0/dim-0 contraction
    # uses the MXU transposed-LHS path rather than an explicit XLU transpose.
    bmeans_sc[...] += lax.dot_general(assign.astype(matmul_dtype),
                                      x.astype(matmul_dtype),
                                      (((0,), (0,)), ((), ())),
                                      preferred_element_type=jnp.float32)  # (C, D)
    sizes_sc[...] += jnp.sum(assign, axis=0, keepdims=True)        # (1, C)

    @pl.when(ni == n_ni - 1)
    def _():
        refresh_means(bmeans_sc[...] / (sizes_sc[...].T + 1e-8))

    @pl.when(jnp.logical_and(it == n_it - 1, ni == n_ni - 1))
    def _():
        embed_ref[0] = means_sc[...]


# --------------------------------------------------------------------------- #
# Kernel 2: forward (L2 norm, -squared distances, gumbel-softmax, gather).
# Grid = (h, n_tiles); codebook block (C, D) stays resident per h and its
# normalized/cast/transposed form is computed once per h into scratch.
# --------------------------------------------------------------------------- #
def _forward_kernel(x_ref, g_ref, embed_ref,
                    quant_ref, ind_ref, dist_ref, flat_ref,
                    ent_sc, esq_sc, *, matmul_dtype):
    ni = pl.program_id(1)

    @pl.when(ni == 0)
    def _():
        emb0 = embed_ref[0]                                          # (C, D) f32
        en = emb0 / (jnp.sqrt(jnp.sum(emb0 * emb0, axis=-1, keepdims=True)) + 1e-8)
        ent_sc[...] = en.astype(matmul_dtype).T                      # (D, C)
        esq_sc[...] = jnp.sum(en * en, axis=-1, keepdims=True).T     # (1, C)

    x = x_ref[0]                        # (tn, D) f32
    emb = embed_ref[0]                  # (C, D) f32 (un-normalized gather source)
    tn = x.shape[0]
    c = emb.shape[0]

    # L2 normalize: v / (||v|| + 1e-8), matching the torch forward.
    xn = x / (jnp.sqrt(jnp.sum(x * x, axis=-1, keepdims=True)) + 1e-8)
    flat_ref[0] = xn.reshape(flat_ref.shape[1:])                     # lane-dense store

    # dist = -||xn - en||^2 = 2 xn@en^T - ||xn||^2 - ||en||^2
    xn_sq = jnp.sum(xn * xn, axis=-1, keepdims=True)                 # (tn, 1)
    cross = jnp.dot(xn.astype(matmul_dtype), ent_sc[...],
                    preferred_element_type=jnp.float32)              # (tn, C)
    dist = 2.0 * cross - xn_sq - esq_sc[...]
    dist_ref[0] = dist.reshape(dist_ref.shape[1:])                   # lane-dense store

    # F.gumbel_softmax(dist, tau=1.0, hard=False); Gumbel(0,1) noise streamed in.
    z = dist + g_ref[0].astype(jnp.float32)
    z = z - jnp.max(z, axis=-1, keepdims=True)
    p = jnp.exp(z)
    one_hot = p / jnp.sum(p, axis=-1, keepdims=True)                 # (tn, C)

    # soft indices = one_hot @ arange(C)  (returned as float, like the ref).
    codes = lax.broadcasted_iota(jnp.float32, (tn, c), 1)
    soft_idx = jnp.sum(one_hot * codes, axis=-1, keepdims=True)      # (tn, 1)
    ind_ref[0] = soft_idx.T                                          # lane-dense (1, tn)

    # batched_embedding: quantize[n, :] = embed[floor(soft_idx[n]), :] via a
    # one-hot matmul; precision=HIGHEST keeps gathered rows exact f32 copies.
    hard_one_hot = (codes == jnp.floor(soft_idx)).astype(jnp.float32)
    quant = jnp.dot(hard_one_hot, emb, preferred_element_type=jnp.float32,
                    precision=lax.Precision.HIGHEST)
    quant_ref[0] = quant.reshape(quant_ref.shape[1:])                # lane-dense store


def euclidean_codebook_forward(x, codebook_size, num_codebooks=1,
                               kmeans_iters=None, seed=0, tile_n=None,
                               use_bf16_matmul=True, pack_outputs=True):
    """Mirrors EuclideanCodebook.forward.

    Returns (quantize, embed_ind, dist, embed, flatten, init_cb).
    """
    x = x.astype(jnp.float32)
    needs_codebook_dim = x.ndim < 4
    if needs_codebook_dim:
        x = x[None, ...]                    # rearrange '... -> 1 ...'
    h = x.shape[0]
    d = x.shape[-1]
    assert h == num_codebooks
    flatten = x.reshape(h, -1, d)           # rearrange 'h ... d -> h (...) d'
    n = flatten.shape[1]
    c = codebook_size

    # Reference quirk: init_embed_ calls soft_kmeans(data, args.codebook_size),
    # i.e. codebook_size is passed as the *number of iterations*.  Kept as the
    # default for parity; override via kmeans_iters.
    if kmeans_iters is None:
        kmeans_iters = codebook_size

    matmul_dtype = jnp.bfloat16 if use_bf16_matmul else jnp.float32
    vmem_limit = _vmem_limit_bytes()
    budget = vmem_limit // 2                # headroom for codebook blocks + scratch

    # Forward-kernel per-tile VMEM: double-buffered x/quant/flat (tn,D f32),
    # dist (tn,C f32), gumbel noise (tn,C bf16), ind (tn f32).
    def fwd_tile_bytes(t):
        return 2 * (3 * t * d * 4 + t * c * 4 + t * c * 2 + t * 4)

    if tile_n is not None:
        assert tile_n % 128 == 0, "tile_n must be a multiple of 128"
        tn_fwd, n_pad = tile_n, _round_up(n, tile_n)
    else:
        tn_fwd, n_pad = _pick_tile_n(n, fwd_tile_bytes, budget)
    n_tiles = n_pad // tn_fwd

    # K-means tile: keep the whole (padded) x slab resident across iterations
    # when it fits (constant block index over `it` -> Pallas skips the re-DMA).
    resident_bytes = 2 * n_pad * d * 4 + 4 * c * d * 4
    tn_km = n_pad if resident_bytes <= budget else tn_fwd

    if n_pad != n:
        flatten = jnp.pad(flatten, ((0, 0), (0, n_pad - n), (0, 0)))

    means_init = jax.random.normal(jax.random.PRNGKey(seed), (h, c, d), jnp.float32)
    gumbel = jax.random.gumbel(jax.random.PRNGKey(seed + 1), (h, n_pad, c),
                               jnp.float32).astype(jnp.bfloat16)

    # ---- kernel 1: soft k-means init --------------------------------------
    embed = pl.pallas_call(
        functools.partial(_kmeans_kernel, matmul_dtype=matmul_dtype,
                          n_valid=(n if n_pad != n else None), tile_n=tn_km),
        out_shape=jax.ShapeDtypeStruct((h, c, d), jnp.float32),
        grid_spec=pltpu.PrefetchScalarGridSpec(
            num_scalar_prefetch=0,
            grid=(h, kmeans_iters, n_pad // tn_km),
            in_specs=[
                pl.BlockSpec((1, tn_km, d), lambda hi, it, ni: (hi, ni, 0)),
                pl.BlockSpec((1, c, d), lambda hi, it, ni: (hi, 0, 0)),
            ],
            out_specs=pl.BlockSpec((1, c, d), lambda hi, it, ni: (hi, 0, 0)),
            scratch_shapes=[
                pltpu.VMEM((c, d), jnp.float32),    # current means (f32)
                pltpu.VMEM((d, c), matmul_dtype),   # means^T in matmul dtype
                pltpu.VMEM((1, c), jnp.float32),    # ||means||^2
                pltpu.VMEM((c, d), jnp.float32),    # sum_n assign^T x
                pltpu.VMEM((1, c), jnp.float32),    # cluster sizes
            ],
        ),
        compiler_params=pltpu.CompilerParams(
            dimension_semantics=("parallel", "arbitrary", "arbitrary"),
            vmem_limit_bytes=vmem_limit,
        ),
    )(flatten, means_init)                                   # (h, C, D)

    # ---- kernel 2: forward (dist / gumbel-softmax / gather) ---------------
    if pack_outputs:
        qr, qc = _packed_cols(tn_fwd, d)
        dr, dc = _packed_cols(tn_fwd, c)
    else:
        qr, qc, dr, dc = tn_fwd, d, tn_fwd, c

    quant, ind, dist, flat = pl.pallas_call(
        functools.partial(_forward_kernel, matmul_dtype=matmul_dtype),
        out_shape=(
            jax.ShapeDtypeStruct((h, n_tiles * qr, qc), jnp.float32),  # quantize
            jax.ShapeDtypeStruct((h, 1, n_pad), jnp.float32),          # embed_ind
            jax.ShapeDtypeStruct((h, n_tiles * dr, dc), jnp.float32),  # dist
            jax.ShapeDtypeStruct((h, n_tiles * qr, qc), jnp.float32),  # flatten
        ),
        grid_spec=pltpu.PrefetchScalarGridSpec(
            num_scalar_prefetch=0,
            grid=(h, n_tiles),
            in_specs=[
                pl.BlockSpec((1, tn_fwd, d), lambda hi, ni: (hi, ni, 0)),
                pl.BlockSpec((1, tn_fwd, c), lambda hi, ni: (hi, ni, 0)),
                pl.BlockSpec((1, c, d), lambda hi, ni: (hi, 0, 0)),
            ],
            out_specs=(
                pl.BlockSpec((1, qr, qc), lambda hi, ni: (hi, ni, 0)),
                pl.BlockSpec((1, 1, tn_fwd), lambda hi, ni: (hi, 0, ni)),
                pl.BlockSpec((1, dr, dc), lambda hi, ni: (hi, ni, 0)),
                pl.BlockSpec((1, qr, qc), lambda hi, ni: (hi, ni, 0)),
            ),
            scratch_shapes=[
                pltpu.VMEM((d, c), matmul_dtype),   # normalized codebook^T
                pltpu.VMEM((1, c), jnp.float32),    # ||en||^2
            ],
        ),
        compiler_params=pltpu.CompilerParams(
            # ni is "arbitrary": the codebook normalization is hoisted under
            # @pl.when(ni == 0) and must run before the other N-tiles.
            dimension_semantics=("parallel", "arbitrary"),
            vmem_limit_bytes=vmem_limit,
        ),
    )(flatten, gumbel, embed)

    # unpack the lane-dense slabs (row-major preserving reshape) + drop padding
    quant = quant.reshape(h, n_pad, d)[:, :n]
    flat = flat.reshape(h, n_pad, d)[:, :n]
    dist = dist.reshape(h, n_pad, c)[:, :n]
    ind = ind[:, 0, :n]                                       # (h, N)

    quantize = quant.reshape(1, h * n, d)      # intended batched_embedding layout
    embed_ind = ind.reshape(1, h * n, 1)       # embed_ind.view(1, -1, 1)
    init_cb = embed                            # embed.detach().clone() after init
    return quantize, embed_ind, dist, embed, flat, init_cb


if __name__ == "__main__":
    # x.ndim == 3 < 4 -> codebook dim is added; flattened N = B*S = 256.
    B, S, D = 2, 128, 32
    codebook_size = 64
    N = B * S
    x = jax.random.normal(jax.random.PRNGKey(0), (B, S, D), jnp.float32)

    def check(outs, tag):
        quantize, embed_ind, dist, embed, flatten, init_cb = outs
        assert quantize.shape == (1, N, D), tag
        assert embed_ind.shape == (1, N, 1), tag
        assert dist.shape == (1, N, codebook_size), tag
        assert embed.shape == (1, codebook_size, D), tag
        assert flatten.shape == (1, N, D), tag
        assert init_cb.shape == (1, codebook_size, D), tag
        for a in (quantize, dist, embed, flatten):
            assert bool(jnp.all(jnp.isfinite(a))), tag
        assert float(embed_ind.min()) >= 0.0, tag
        assert float(embed_ind.max()) < codebook_size, tag

        # gather exactness: quantize rows must be exact codebook rows at floor(ind)
        idx = jnp.floor(embed_ind[0, :, 0]).astype(jnp.int32)
        gathered = jnp.take(embed[0], idx, axis=0)
        assert bool(jnp.allclose(quantize[0], gathered, atol=1e-5)), tag

        # dist / flatten vs a pure-JAX reference given the kernel's codebook
        # (bf16 MXU cross term -> loose tolerance on dist).
        flt = x.astype(jnp.float32).reshape(1, N, D)
        fn = flt / (jnp.linalg.norm(flt, axis=-1, keepdims=True) + 1e-8)
        en = embed / (jnp.linalg.norm(embed, axis=-1, keepdims=True) + 1e-8)
        dref = -jnp.sum((fn[:, :, None, :] - en[:, None, :, :]) ** 2, axis=-1)
        assert bool(jnp.allclose(flatten, fn, atol=1e-5)), tag
        assert bool(jnp.allclose(dist, dref, atol=5e-2)), tag

    # auto tiling: padded x slab stays VMEM-resident across all k-means iters
    outs = jax.block_until_ready(
        euclidean_codebook_forward(x, codebook_size, num_codebooks=1, seed=0))
    check(outs, "auto")

    # forced small tile: exercises the multi-tile accumulation / hoist paths
    outs = jax.block_until_ready(
        euclidean_codebook_forward(x, codebook_size, num_codebooks=1, seed=0,
                                   tile_n=128))
    check(outs, "tiled")

    print("KERNEL_OK")
</pallas_src>

<mosaic_0001>
module attributes {stable_mosaic.version = 11 : i64} {
  func.func @_kmeans_kernel(%arg0: i32, %arg1: i32, %arg2: i32, %arg3: memref<1x256x32xf32, #tpu.memory_space<vmem>>, %arg4: memref<1x64x32xf32, #tpu.memory_space<vmem>>, %arg5: memref<1x64x32xf32, #tpu.memory_space<vmem>>, %arg6: memref<64x32xf32, #tpu.memory_space<vmem>>, %arg7: memref<32x64xbf16, #tpu.memory_space<vmem>>, %arg8: memref<1x64xf32, #tpu.memory_space<vmem>>, %arg9: memref<64x32xf32, #tpu.memory_space<vmem>>, %arg10: memref<1x64xf32, #tpu.memory_space<vmem>>) attributes {dimension_semantics = [#tpu.dimension_semantics<parallel>, #tpu.dimension_semantics<arbitrary>, #tpu.dimension_semantics<arbitrary>], iteration_bounds = array<i64: 1, 64, 1>, scalar_prefetch = 0 : i64, scratch_operands = 5 : i64, tpu.core_type = #tpu.core_type<tc>, window_params = [{transform_indices = @transform_0, window_bounds = array<i64: 1, 256, 32>}, {transform_indices = @transform_1, window_bounds = array<i64: 1, 64, 32>}, {transform_indices = @transform_2, window_bounds = array<i64: 1, 64, 32>}]} {
    %c0_i32 = arith.constant 0 : i32
    %0 = arith.cmpi eq, %arg1, %c0_i32 : i32
    %c0_i32_0 = arith.constant 0 : i32
    %1 = arith.cmpi eq, %arg2, %c0_i32_0 : i32
    %2 = arith.andi %0, %1 : i1
    %3 = arith.extui %2 : i1 to i32
    %c0_i32_1 = arith.constant 0 : i32
    %4 = arith.cmpi ne, %3, %c0_i32_1 : i32
    scf.if %4 {
      %c0_27 = arith.constant 0 : index
      %c0_28 = arith.constant 0 : index
      %c0_29 = arith.constant 0 : index
      %46 = vector.load %arg4[%c0_27, %c0_28, %c0_29] : memref<1x64x32xf32, #tpu.memory_space<vmem>>, vector<1x64x32xf32>
      %47 = vector.shape_cast %46 : vector<1x64x32xf32> to vector<64x32xf32>
      %c0_30 = arith.constant 0 : index
      %c0_31 = arith.constant 0 : index
      %48 = vector.load %arg6[%c0_30, %c0_31] : memref<64x32xf32, #tpu.memory_space<vmem>>, vector<64x32xf32>
      tpu.vector_store %arg6[%c0_30, %c0_31], %47 {strides = array<i32>} : memref<64x32xf32, #tpu.memory_space<vmem>>, vector<64x32xf32>,
      %49 = arith.truncf %47 : vector<64x32xf32> to vector<64x32xbf16>
      %50 = tpu.transpose %49, [1, 0] : vector<64x32xbf16> -> vector<32x64xbf16>
      %c0_32 = arith.constant 0 : index
      %c0_33 = arith.constant 0 : index
      %51 = vector.load %arg7[%c0_32, %c0_33] : memref<32x64xbf16, #tpu.memory_space<vmem>>, vector<32x64xbf16>
      tpu.vector_store %arg7[%c0_32, %c0_33], %50 {strides = array<i32>} : memref<32x64xbf16, #tpu.memory_space<vmem>>, vector<32x64xbf16>,
      %52 = arith.mulf %47, %47 : vector<64x32xf32>
      %cst_34 = arith.constant dense<0.000000e+00> : vector<64xf32>
      %53 = vector.multi_reduction <add>, %52, %cst_34 [1] : vector<64x32xf32> to vector<64xf32>
      %54 = vector.shape_cast %53 : vector<64xf32> to vector<64x1xf32>
      %55 = tpu.transpose %54, [1, 0] : vector<64x1xf32> -> vector<1x64xf32>
      %c0_35 = arith.constant 0 : index
      %c0_36 = arith.constant 0 : index
      %56 = vector.load %arg8[%c0_35, %c0_36] : memref<1x64xf32, #tpu.memory_space<vmem>>, vector<1x64xf32>
      tpu.vector_store %arg8[%c0_35, %c0_36], %55 {strides = array<i32>} : memref<1x64xf32, #tpu.memory_space<vmem>>, vector<1x64xf32>,
    } else {
    }
    %c0_i32_2 = arith.constant 0 : i32
    %5 = arith.cmpi eq, %arg2, %c0_i32_2 : i32
    %6 = arith.extui %5 : i1 to i32
    %c0_i32_3 = arith.constant 0 : i32
    %7 = arith.cmpi ne, %6, %c0_i32_3 : i32
    scf.if %7 {
      %cst_27 = arith.constant 0.000000e+00 : f32
      %46 = vector.broadcast %cst_27 : f32 to vector<64x32xf32>
      %c0_28 = arith.constant 0 : index
      %c0_29 = arith.constant 0 : index
      %47 = vector.load %arg9[%c0_28, %c0_29] : memref<64x32xf32, #tpu.memory_space<vmem>>, vector<64x32xf32>
      tpu.vector_store %arg9[%c0_28, %c0_29], %46 {strides = array<i32>} : memref<64x32xf32, #tpu.memory_space<vmem>>, vector<64x32xf32>,
      %cst_30 = arith.constant 0.000000e+00 : f32
      %48 = vector.broadcast %cst_30 : f32 to vector<1x64xf32>
      %c0_31 = arith.constant 0 : index
      %c0_32 = arith.constant 0 : index
      %49 = vector.load %arg10[%c0_31, %c0_32] : memref<1x64xf32, #tpu.memory_space<vmem>>, vector<1x64xf32>
      tpu.vector_store %arg10[%c0_31, %c0_32], %48 {strides = array<i32>} : memref<1x64xf32, #tpu.memory_space<vmem>>, vector<1x64xf32>,
    } else {
    }
    %c0 = arith.constant 0 : index
    %c0_4 = arith.constant 0 : index
    %c0_5 = arith.constant 0 : index
    %8 = vector.load %arg3[%c0, %c0_4, %c0_5] : memref<1x256x32xf32, #tpu.memory_space<vmem>>, vector<1x256x32xf32>
    %9 = vector.shape_cast %8 : vector<1x256x32xf32> to vector<256x32xf32>
    %10 = arith.truncf %9 : vector<256x32xf32> to vector<256x32xbf16>
    %c0_6 = arith.constant 0 : index
    %c0_7 = arith.constant 0 : index
    %11 = vector.load %arg7[%c0_6, %c0_7] : memref<32x64xbf16, #tpu.memory_space<vmem>>, vector<32x64xbf16>
    %cst = arith.constant dense<0.000000e+00> : vector<256x64xf32>
    %12 = tpu.matmul %10, %11, %cst {dimension_numbers = #tpu.dot_dimension_numbers<[1], [0], [0], [1], [0, 0, 1, 1], [], []>} : vector<256x32xbf16>, vector<32x64xbf16>, vector<256x64xf32> -> vector<256x64xf32>
    %cst_8 = arith.constant 2.000000e+00 : f32
    %13 = vector.broadcast %cst_8 : f32 to vector<256x64xf32>
    %14 = arith.mulf %13, %12 : vector<256x64xf32>
    %c0_9 = arith.constant 0 : index
    %c0_10 = arith.constant 0 : index
    %15 = vector.load %arg8[%c0_9, %c0_10] : memref<1x64xf32, #tpu.memory_space<vmem>>, vector<1x64xf32>
    %16 = vector.broadcast %15 : vector<1x64xf32> to vector<256x64xf32>
    %17 = arith.subf %14, %16 : vector<256x64xf32>
    %cst_11 = arith.constant dense<0xFF800000> : vector<256xf32>
    %18 = vector.multi_reduction <maximumf>, %17, %cst_11 [1] : vector<256x64xf32> to vector<256xf32>
    %19 = vector.shape_cast %18 : vector<256xf32> to vector<256x1xf32>
    %20 = vector.broadcast %19 : vector<256x1xf32> to vector<256x64xf32>
    %21 = arith.subf %17, %20 : vector<256x64xf32>
    %22 = math.exp %21 : vector<256x64xf32>
    %cst_12 = arith.constant dense<0.000000e+00> : vector<256xf32>
    %23 = vector.multi_reduction <add>, %22, %cst_12 [1] : vector<256x64xf32> to vector<256xf32>
    %24 = vector.shape_cast %23 : vector<256xf32> to vector<256x1xf32>
    %25 = vector.broadcast %24 : vector<256x1xf32> to vector<256x64xf32>
    %26 = arith.divf %22, %25 : vector<256x64xf32>
    %c0_13 = arith.constant 0 : index
    %c0_14 = arith.constant 0 : index
    %27 = vector.load %arg9[%c0_13, %c0_14] : memref<64x32xf32, #tpu.memory_space<vmem>>, vector<64x32xf32>
    %28 = arith.truncf %26 : vector<256x64xf32> to vector<256x64xbf16>
    %29 = arith.truncf %9 : vector<256x32xf32> to vector<256x32xbf16>
    %cst_15 = arith.constant dense<0.000000e+00> : vector<64x32xf32>
    %30 = tpu.matmul %28, %29, %cst_15 {dimension_numbers = #tpu.dot_dimension_numbers<[0], [0], [1], [1], [0, 1, 1, 1], [], []>} : vector<256x64xbf16>, vector<256x32xbf16>, vector<64x32xf32> -> vector<64x32xf32>
    %31 = arith.addf %27, %30 : vector<64x32xf32>
    %c0_16 = arith.constant 0 : index
    %c0_17 = arith.constant 0 : index
    %32 = vector.load %arg9[%c0_16, %c0_17] : memref<64x32xf32, #tpu.memory_space<vmem>>, vector<64x32xf32>
    tpu.vector_store %arg9[%c0_16, %c0_17], %31 {strides = array<i32>} : memref<64x32xf32, #tpu.memory_space<vmem>>, vector<64x32xf32>,
    %c0_18 = arith.constant 0 : index
    %c0_19 = arith.constant 0 : index
    %33 = vector.load %arg10[%c0_18, %c0_19] : memref<1x64xf32, #tpu.memory_space<vmem>>, vector<1x64xf32>
    %cst_20 = arith.constant dense<0.000000e+00> : vector<64xf32>
    %34 = vector.multi_reduction <add>, %26, %cst_20 [0] : vector<256x64xf32> to vector<64xf32>
    %35 = vector.shape_cast %34 : vector<64xf32> to vector<1x64xf32>
    %36 = arith.addf %33, %35 : vector<1x64xf32>
    %c0_21 = arith.constant 0 : index
    %c0_22 = arith.constant 0 : index
    %37 = vector.load %arg10[%c0_21, %c0_22] : memref<1x64xf32, #tpu.memory_space<vmem>>, vector<1x64xf32>
    tpu.vector_store %arg10[%c0_21, %c0_22], %36 {strides = array<i32>} : memref<1x64xf32, #tpu.memory_space<vmem>>, vector<1x64xf32>,
    %c0_i32_23 = arith.constant 0 : i32
    %38 = arith.cmpi eq, %arg2, %c0_i32_23 : i32
    %39 = arith.extui %38 : i1 to i32
    %c0_i32_24 = arith.constant 0 : i32
    %40 = arith.cmpi ne, %39, %c0_i32_24 : i32
    scf.if %40 {
      %c0_27 = arith.constant 0 : index
      %c0_28 = arith.constant 0 : index
      %46 = vector.load %arg9[%c0_27, %c0_28] : memref<64x32xf32, #tpu.memory_space<vmem>>, vector<64x32xf32>
      %c0_29 = arith.constant 0 : index
      %c0_30 = arith.constant 0 : index
      %47 = vector.load %arg10[%c0_29, %c0_30] : memref<1x64xf32, #tpu.memory_space<vmem>>, vector<1x64xf32>
      %48 = tpu.transpose %47, [1, 0] : vector<1x64xf32> -> vector<64x1xf32>
      %cst_31 = arith.constant 9.99999993E-9 : f32
      %49 = vector.broadcast %cst_31 : f32 to vector<64x1xf32>
      %50 = arith.addf %48, %49 : vector<64x1xf32>
      %51 = vector.broadcast %50 : vector<64x1xf32> to vector<64x32xf32>
      %52 = arith.divf %46, %51 : vector<64x32xf32>
      %c0_32 = arith.constant 0 : index
      %c0_33 = arith.constant 0 : index
      %53 = vector.load %arg6[%c0_32, %c0_33] : memref<64x32xf32, #tpu.memory_space<vmem>>, vector<64x32xf32>
      tpu.vector_store %arg6[%c0_32, %c0_33], %52 {strides = array<i32>} : memref<64x32xf32, #tpu.memory_space<vmem>>, vector<64x32xf32>,
      %54 = arith.truncf %52 : vector<64x32xf32> to vector<64x32xbf16>
      %55 = tpu.transpose %54, [1, 0] : vector<64x32xbf16> -> vector<32x64xbf16>
      %c0_34 = arith.constant 0 : index
      %c0_35 = arith.constant 0 : index
      %56 = vector.load %arg7[%c0_34, %c0_35] : memref<32x64xbf16, #tpu.memory_space<vmem>>, vector<32x64xbf16>
      tpu.vector_store %arg7[%c0_34, %c0_35], %55 {strides = array<i32>} : memref<32x64xbf16, #tpu.memory_space<vmem>>, vector<32x64xbf16>,
      %57 = arith.mulf %52, %52 : vector<64x32xf32>
      %cst_36 = arith.constant dense<0.000000e+00> : vector<64xf32>
      %58 = vector.multi_reduction <add>, %57, %cst_36 [1] : vector<64x32xf32> to vector<64xf32>
      %59 = vector.shape_cast %58 : vector<64xf32> to vector<64x1xf32>
      %60 = tpu.transpose %59, [1, 0] : vector<64x1xf32> -> vector<1x64xf32>
      %c0_37 = arith.constant 0 : index
      %c0_38 = arith.constant 0 : index
      %61 = vector.load %arg8[%c0_37, %c0_38] : memref<1x64xf32, #tpu.memory_space<vmem>>, vector<1x64xf32>
      tpu.vector_store %arg8[%c0_37, %c0_38], %60 {strides = array<i32>} : memref<1x64xf32, #tpu.memory_space<vmem>>, vector<1x64xf32>,
    } else {
    }
    %c63_i32 = arith.constant 63 : i32
    %41 = arith.cmpi eq, %arg1, %c63_i32 : i32
    %c0_i32_25 = arith.constant 0 : i32
    %42 = arith.cmpi eq, %arg2, %c0_i32_25 : i32
    %43 = arith.andi %41, %42 : i1
    %44 = arith.extui %43 : i1 to i32
    %c0_i32_26 = arith.constant 0 : i32
    %45 = arith.cmpi ne, %44, %c0_i32_26 : i32
    scf.if %45 {
      %c0_27 = arith.constant 0 : index
      %c0_28 = arith.constant 0 : index
      %46 = vector.load %arg6[%c0_27, %c0_28] : memref<64x32xf32, #tpu.memory_space<vmem>>, vector<64x32xf32>
      %c0_29 = arith.constant 0 : index
      %c0_30 = arith.constant 0 : index
      %c0_31 = arith.constant 0 : index
      %47 = vector.load %arg5[%c0_29, %c0_30, %c0_31] : memref<1x64x32xf32, #tpu.memory_space<vmem>>, vector<1x64x32xf32>
      %48 = vector.shape_cast %47 : vector<1x64x32xf32> to vector<64x32xf32>
      %49 = vector.shape_cast %46 : vector<64x32xf32> to vector<1x64x32xf32>
      tpu.vector_store %arg5[%c0_29, %c0_30, %c0_31], %49 {strides = array<i32>} : memref<1x64x32xf32, #tpu.memory_space<vmem>>, vector<1x64x32xf32>,
    } else {
    }
    return
  }
  func.func @transform_0(%arg0: i32, %arg1: i32, %arg2: i32) -> (i32, i32, i32) {
    %c0_i32 = arith.constant 0 : i32
    %c0_i32_0 = arith.constant 0 : i32
    return %arg0, %arg2, %c0_i32 : i32, i32, i32
  }
  func.func @transform_1(%arg0: i32, %arg1: i32, %arg2: i32) -> (i32, i32, i32) {
    %c0_i32 = arith.constant 0 : i32
    %c0_i32_0 = arith.constant 0 : i32
    %c0_i32_1 = arith.constant 0 : i32
    return %arg0, %c0_i32, %c0_i32_0 : i32, i32, i32
  }
  func.func @transform_2(%arg0: i32, %arg1: i32, %arg2: i32) -> (i32, i32, i32) {
    %c0_i32 = arith.constant 0 : i32
    %c0_i32_0 = arith.constant 0 : i32
    %c0_i32_1 = arith.constant 0 : i32
    return %arg0, %c0_i32, %c0_i32_0 : i32, i32, i32
  }
}

</mosaic_0001>

<bundles_post_ra>
// kernel: tpu_custom_call.1
= control target key start
LH: loop header
LB: loop body
LE: loop exit
PB: predicated region body
PF: predicated region fallthrough
CT: control target
= control target key end

     0   :  { %s2297_s9 = smov 0   ;;  %s2299_s10 = smov 0   ;;  %s4051_s0 = inlined_call_operand.vmem [shape: f32[1,256,32], index: 0, kind: input, shape index: {}]   ;;  %s4052_s1 = inlined_call_operand.vmem [shape: f32[1,64,32], index: 1, kind: input, shape index: {}]   ;;  %s4053_s2 = inlined_call_operand.vmem [shape: f32[1,64,32], index: 2, kind: output, shape index: {}]  }
   0x1   :  { %s2301_s11 = smov 0  }
   0x2 LB: > { %s27_s12 = sadd.s32 1, %s2274_s10  ;;  %p2021_p0 = scmp.ge.s32.totalorder %s2278_s11, 1  ;;  %s2278_s11 = sphi %s2301_s11, %s12_s11   ;;  %s2274_s10 = sphi %s2299_s10, %s4269_s10   ;;  %s2270_s9 = sphi %s2297_s9, %s4268_s9  }
   0x3   : > { %p29_p1 = scmp.ge.s32.totalorder %s27_s12, 64  ;;  %p148_p2 = scmp.lt.s32.totalorder %s2278_s11, 65 }
   0x5   : > { %s4271_s12 = smov (%p29_p1, %s27_s12), 0  ;;  %p149_p3 = pnand %p2021_p0, %p148_p2 }
   0x7   : > { %152 = sbr.rel (%p149_p3) target bundleno = 1456 (0x5b0), region = 28 }
   0xc   : > { %p200_p4 = scmp.eq.s32.totalorder %s2270_s9, 0 }
   0xd   : > { %v206_v0 = vld [vmem:[%s4052_s1] sm:$0xff] (%p200_p4)  ;;  %vm214_vm0 = vcmask (%p200_p4), 261120   ;;  %v207_v1 = vld [vmem:[%s4052_s1 + $0x8] sm:$0xff] (%p200_p4)  ;;  %v208_v2 = vld [vmem:[%s4052_s1 + $0x10] sm:$0xff] (%p200_p4)  ;;  %vm257_vm1 = vcmask (%p200_p4), 519168   ;;  %vm326_vm2 = vcmask (%p200_p4), 516096  }
   0xe   : > { %205 = sbr.rel (!%p200_p4) target bundleno = 299 (0x12b), region = 32  ;;  %v262_v3 = vmul.f32 (%p200_p4), %v206_v0, %v206_v0  ;;  %215 = vst.msk [vmem:[#allocation2] sm:$0xff] (%p200_p4), %vm214_vm0, %v206_v0  ;;  %v264_v4 = vmul.f32 (%p200_p4), %v208_v2, %v208_v2  ;;  %v223_v5 = vpack.c.bf16 (%p200_p4), %v207_v1, %v206_v0  ;;  %v209_v6 = vld [vmem:[%s4052_s1 + $0x18] sm:$0xff] (%p200_p4)  ;;  %v210_v9 = vld [vmem:[%s4052_s1 + $0x20] sm:$0xff] (%p200_p4)  ;;  %v263_v10 = vmul.f32 (%p200_p4), %v207_v1, %v207_v1  ;;  %v211_v12 = vld [vmem:[%s4052_s1 + $0x28] sm:$0xff] (%p200_p4) }
   0xf   : > { %216 = vst.msk [vmem:[#allocation2 + $0x8] sm:$0xff] (%p200_p4), %vm214_vm0, %v207_v1  ;;  %v265_v11 = vmul.f32 (%p200_p4), %v209_v6, %v209_v6  ;;  %v212_v13 = vld [vmem:[%s4052_s1 + $0x30] sm:$0xff] (%p200_p4)  ;;  %v213_v14 = vld [vmem:[%s4052_s1 + $0x38] sm:$0xff] (%p200_p4)  ;;  %v266_v17 = vmul.f32 (%p200_p4), %v210_v9, %v210_v9  ;;  %v267_v18 = vmul.f32 (%p200_p4), %v211_v12, %v211_v12  ;;  %v224_v19 = vpack.c.bf16 (%p200_p4), %v209_v6, %v208_v2 }
  0x10   : > { %v270_v7 = vsel (%p200_p4), %vm214_vm0, %v262_v3, 0.0  ;;  %v276_v8 = vsel (%p200_p4), %vm214_vm0, %v264_v4, 0.0  ;;  %217 = vst.msk [vmem:[#allocation2 + $0x10] sm:$0xff] (%p200_p4), %vm214_vm0, %v208_v2  ;;  %227 = vxpose.xlu0.c.b16.start [1/4] (short) (narrow) (%p200_p4), %v223_v5, 32  ;;  %v273_v15 = vsel (%p200_p4), %vm214_vm0, %v263_v10, 0.0  ;;  %v268_v22 = vmul.f32 (%p200_p4), %v212_v13, %v212_v13 }
  0x11   : > { %271 = vadd.xlane.f32.xlu1 (%p200_p4), %v270_v7  ;;  %277 = vadd.xlane.f32.xlu2 (%p200_p4), %v276_v8  ;;  %218 = vst.msk [vmem:[#allocation2 + $0x18] sm:$0xff] (%p200_p4), %vm214_vm0, %v209_v6  ;;  %v279_v16 = vsel (%p200_p4), %vm214_vm0, %v265_v11, 0.0  ;;  %v282_v20 = vsel (%p200_p4), %vm214_vm0, %v266_v17, 0.0  ;;  %v285_v21 = vsel (%p200_p4), %vm214_vm0, %v267_v18, 0.0  ;;  %v269_v23 = vmul.f32 (%p200_p4), %v213_v14, %v213_v14 }
  0x12   : > { %219 = vst.msk [vmem:[#allocation2 + $0x20] sm:$0xff] (%p200_p4), %vm214_vm0, %v210_v9  ;;  %v288_v24 = vsel (%p200_p4), %vm214_vm0, %v268_v22, 0.0  ;;  %v225_v26 = vpack.c.bf16 (%p200_p4), %v211_v12, %v210_v9  ;;  %v226_v27 = vpack.c.bf16 (%p200_p4), %v213_v14, %v212_v13 }
  0x13   : > { %220 = vst.msk [vmem:[#allocation2 + $0x28] sm:$0xff] %vm214_vm0, %v211_v12  ;;  %v291_v25 = vsel %vm214_vm0, %v269_v23, 0.0 }
  0x14   : > { %221 = vst.msk [vmem:[#allocation2 + $0x30] sm:$0xff] %vm214_vm0, %v212_v13 }
  0x15   : > { %222 = vst.msk [vmem:[#allocation2 + $0x38] sm:$0xff] %vm214_vm0, %v213_v14 }
  0x19   : > { %274 = vadd.xlane.f32.xlu1 %v273_v15  ;;  %280 = vadd.xlane.f32.xlu2 %v279_v16 }
  0x20   : > { %228 = vxpose.xlu0.c.b16.cont [2/4] (short) (narrow) %v224_v19, 32 }
  0x21   : > { %283 = vadd.xlane.f32.xlu1 %v282_v20  ;;  %286 = vadd.xlane.f32.xlu2 %v285_v21 }
  0x29   : > { %289 = vadd.xlane.f32.xlu1 %v288_v24  ;;  %292 = vadd.xlane.f32.xlu2 %v291_v25 }
  0x30   : > { %229 = vxpose.xlu0.c.b16.cont [3/4] (short) (narrow) %v225_v26, 32 }
  0x40   : > { %230 = vxpose.xlu0.c.b16.end [4/4] (short) (narrow) %v226_v27, 32 }
  0x84   : > { %v272_v28 = vpop.xlane.xlu1 %271  ;;  %v278_v30 = vpop.xlane.xlu2 %277 }
  0x85   : > { %294 = vxpose.xlu1.b32.start [1/8] (short) (narrow) %v272_v28, 8 }
  0x8c   : > { %v275_v29 = vpop.xlane.xlu1 %274  ;;  %v281_v31 = vpop.xlane.xlu2 %280 }
  0x8d   : > { %295 = vxpose.xlu1.b32.cont [2/8] (short) (narrow) %v275_v29, 8 }
  0x94   : > { %v284_v32 = vpop.xlane.xlu1 %283  ;;  %v287_v33 = vpop.xlane.xlu2 %286 }
  0x95   : > { %296 = vxpose.xlu1.b32.cont [3/8] (short) (narrow) %v278_v30, 8 }
  0x9c   : > { %v290_v34 = vpop.xlane.xlu1 %289  ;;  %v293_v35 = vpop.xlane.xlu2 %292 }
  0x9d   : > { %297 = vxpose.xlu1.b32.cont [4/8] (short) (narrow) %v281_v31, 8 }
  0xa5   : > { %298 = vxpose.xlu1.b32.cont [5/8] (short) (narrow) %v284_v32, 8 }
  0xad   : > { %299 = vxpose.xlu1.b32.cont [6/8] (short) (narrow) %v287_v33, 8 }
  0xb5   : > { %300 = vxpose.xlu1.b32.cont [7/8] (short) (narrow) %v290_v34, 8 }
  0xbc   : > { %v235_v36 = vpop.trf.xlu0 }
  0xbd   : > { %301 = vxpose.xlu1.b32.end [8/8] (short) (narrow) %v293_v35, 8  ;;  %v245_v37 = vunpack.c.l.b16 %v235_v36  ;;  %v246_v38 = vunpack.c.h.b16 %v235_v36 }
  0xbf   : > { %v249_v39 = vpack.c.b16 %v245_v37, %v245_v37  ;;  %v250_v40 = vpack.c.b16 %v246_v38, %v246_v38 }
  0xc1   : > { %258 = vst.msk [vmem:[#allocation3] sm:$0xf] %vm257_vm1, %v249_v39 }
  0xc2   : > { %259 = vst.msk [vmem:[#allocation3 + $0x4] sm:$0xf] %vm257_vm1, %v250_v40 }
  0xcc   : > { %v236_v41 = vpop.trf.xlu0 }
  0xcd   : > { %v247_v42 = vunpack.c.l.b16 %v236_v41  ;;  %v248_v43 = vunpack.c.h.b16 %v236_v41 }
  0xcf   : > { %v251_v44 = vpack.c.b16 %v247_v42, %v247_v42  ;;  %v252_v45 = vpack.c.b16 %v248_v43, %v248_v43 }
  0xd1   : > { %260 = vst.msk [vmem:[#allocation3 + $0x8] sm:$0xf] %vm257_vm1, %v251_v44 }
  0xd2   : > { %261 = vst.msk [vmem:[#allocation3 + $0xc] sm:$0xf] %vm257_vm1, %v252_v45 }
 0x129   : > { %v310_v46 = vpop.trf.xlu1 }
 0x12a   : > { %327 = vst.msk [vmem:[#allocation4] sm:$0x1] %vm326_vm2, %v310_v46 }
 0x12b PF: > { %v2053_v47 = vld [vmem:[#allocation3 + $0x8] sm:$0xff]  ;;  %v2052_v48 = vld [vmem:[#allocation3] sm:$0xff]  ;;  %v356_v51 = vld [vmem:[%s4051_s0 + $0x70] sm:$0xff]  ;;  %vm4072_vm3 = vcmask 261120   ;;  %vm612_vm4 = vcmask 523264   ;;  %p1908_p5 = scmp.eq.s32.totalorder %s2270_s9, 63 }
 0x12c   : > { %v342_v49 = vld [vmem:[%s4051_s0] sm:$0xff]  ;;  %461 = vmatpush.bf16.msra.mxu0 %v2053_v47  ;;  %2055 = vmatpush.bf16.msra.mxu1 %v2053_v47  ;;  %v343_v50 = vld [vmem:[%s4051_s0 + $0x8] sm:$0xff]  ;;  %v357_v52 = vld [vmem:[%s4051_s0 + $0x78] sm:$0xff] }
 0x12d   : > { %2056 = vmatpush.bf16.msra.mxu3 %v2053_v47  ;;  %v360_v53 = vld [vmem:[%s4051_s0 + $0x90] sm:$0xff]  ;;  %v361_v54 = vld [vmem:[%s4051_s0 + $0x98] sm:$0xff]  ;;  %v2376_v55 = vpack.c.bf16 %v343_v50, %v342_v49  ;;  %v381_v56 = vpack.c.bf16 %v357_v52, %v356_v51  ;;  %v358_v60 = vld [vmem:[%s4051_s0 + $0x80] sm:$0xff] }
 0x12e   : > { %v2378_v57 = vpack.c.bf16 %v361_v54, %v360_v53  ;;  %v344_v58 = vld [vmem:[%s4051_s0 + $0x10] sm:$0xff]  ;;  %v345_v59 = vld [vmem:[%s4051_s0 + $0x18] sm:$0xff]  ;;  %v359_v61 = vld [vmem:[%s4051_s0 + $0x88] sm:$0xff] }
 0x12f   : > { %v362_v62 = vld [vmem:[%s4051_s0 + $0xa0] sm:$0xff]  ;;  %v363_v63 = vld [vmem:[%s4051_s0 + $0xa8] sm:$0xff]  ;;  %v375_v0 = vpack.c.bf16 %v345_v59, %v344_v58  ;;  %v382_v1 = vpack.c.bf16 %v359_v61, %v358_v60  ;;  %v364_v5 = vld [vmem:[%s4051_s0 + $0xb0] sm:$0xff] }
 0x130   : > { %462 = vmatpush.bf16.msra.mxu0 %v2052_v48  ;;  %2057 = vmatpush.bf16.msra.mxu1 %v2052_v48  ;;  %v384_v2 = vpack.c.bf16 %v363_v63, %v362_v62  ;;  %v346_v3 = vld [vmem:[%s4051_s0 + $0x20] sm:$0xff]  ;;  %v347_v4 = vld [vmem:[%s4051_s0 + $0x28] sm:$0xff]  ;;  %v365_v6 = vld [vmem:[%s4051_s0 + $0xb8] sm:$0xff] }
 0x131   : > { %2058 = vmatpush.bf16.msra.mxu3 %v2052_v48  ;;  %v376_v7 = vpack.c.bf16 %v347_v4, %v346_v3  ;;  %v385_v8 = vpack.c.bf16 %v365_v6, %v364_v5  ;;  %v348_v9 = vld [vmem:[%s4051_s0 + $0x30] sm:$0xff]  ;;  %v349_v10 = vld [vmem:[%s4051_s0 + $0x38] sm:$0xff]  ;;  %v366_v11 = vld [vmem:[%s4051_s0 + $0xc0] sm:$0xff] }
 0x132   : > { %v367_v12 = vld [vmem:[%s4051_s0 + $0xc8] sm:$0xff]  ;;  %v377_v13 = vpack.c.bf16 %v349_v10, %v348_v9  ;;  %v354_v15 = vld [vmem:[%s4051_s0 + $0x60] sm:$0xff]  ;;  %v352_v18 = vld [vmem:[%s4051_s0 + $0x50] sm:$0xff] }
 0x133   : > { %2031 = vmatmul.msk.bf16.vlgmr.msra.gmra.mxu0 %vm4072_vm3, %v2376_v55  ;;  %2038 = vmatmul.msk.bf16.vlgmr.msra.gmra.mxu1 %vm4072_vm3, %v381_v56  ;;  %v386_v14 = vpack.c.bf16 %v367_v12, %v366_v11  ;;  %v355_v16 = vld [vmem:[%s4051_s0 + $0x68] sm:$0xff]  ;;  %v353_v19 = vld [vmem:[%s4051_s0 + $0x58] sm:$0xff]  ;;  %v350_v21 = vld [vmem:[%s4051_s0 + $0x40] sm:$0xff] }
 0x134   : > { %1437 = vmatpush.bf16.msrb.mxu1 %v381_v56  ;;  %2040 = vmatmul.msk.bf16.vlgmr.msra.gmra.mxu3 %vm4072_vm3, %v2378_v57  ;;  %v380_v17 = vpack.c.bf16 %v355_v16, %v354_v15  ;;  %v379_v20 = vpack.c.bf16 %v353_v19, %v352_v18  ;;  %v351_v22 = vld [vmem:[%s4051_s0 + $0x48] sm:$0xff]  ;;  %v368_v24 = vld [vmem:[%s4051_s0 + $0xd0] sm:$0xff]  ;;  %v369_v25 = vld [vmem:[%s4051_s0 + $0xd8] sm:$0xff] }
 0x135   : > { %v378_v23 = vpack.c.bf16 %v351_v22, %v350_v21  ;;  %v387_v26 = vpack.c.bf16 %v369_v25, %v368_v24  ;;  %v372_v27 = vld [vmem:[%s4051_s0 + $0xf0] sm:$0xff]  ;;  %v373_v28 = vld [vmem:[%s4051_s0 + $0xf8] sm:$0xff]  ;;  %v370_v30 = vld [vmem:[%s4051_s0 + $0xe0] sm:$0xff] }
 0x136   : > { %v389_v29 = vpack.c.bf16 %v373_v28, %v372_v27  ;;  %v371_v31 = vld [vmem:[%s4051_s0 + $0xe8] sm:$0xff]  ;;  %v2478_v33 = vld [vmem:[#allocation4] ss:$0 sm:$0xff] }
 0x137   : > { %v388_v32 = vpack.c.bf16 %v371_v31, %v370_v30 }
 0x138   : > { %1438 = vmatpush.bf16.msrb.mxu1 %v380_v17  ;;  %1466 = vmatpush.bf16.msra.mxu2 %v389_v29 }
 0x13c   : > { %1439 = vmatpush.bf16.msrb.mxu1 %v379_v20  ;;  %1467 = vmatpush.bf16.msra.mxu2 %v388_v32 }
 0x140   : > { %1440 = vmatpush.bf16.msrb.mxu1 %v378_v23  ;;  %1468 = vmatpush.bf16.msra.mxu2 %v387_v26 }
 0x143   : > { %2032 = vmatmul.msk.bf16.gmra.mxu0 %vm4072_vm3, %v375_v0  ;;  %2039 = vmatmul.msk.bf16.gmra.mxu1 %vm4072_vm3, %v382_v1 }
 0x144   : > { %2041 = vmatmul.msk.bf16.gmra.mxu3 %vm4072_vm3, %v384_v2  ;;  %1441 = vmatpush.bf16.msrb.mxu1 %v377_v13 }
 0x145   : > { %1469 = vmatpush.bf16.msra.mxu2 %v386_v14 }
 0x148   : > { %1442 = vmatpush.bf16.msrb.mxu1 %v376_v7 }
 0x149   : > { %1470 = vmatpush.bf16.msra.mxu2 %v385_v8 }
 0x14c   : > { %1443 = vmatpush.bf16.msrb.mxu1 %v375_v0 }
 0x14d   : > { %1471 = vmatpush.bf16.msra.mxu2 %v384_v2 }
 0x150   : > { %1444 = vmatpush.bf16.msrb.mxu1 %v2376_v55 }
 0x151   : > { %1472 = vmatpush.bf16.msra.mxu2 %v2378_v57 }
 0x153   : > { %2033 = vmatmul.msk.bf16.gmra.mxu0 %vm4072_vm3, %v376_v7 }
 0x154   : > { %2042 = vmatmul.msk.bf16.gmra.mxu3 %vm4072_vm3, %v385_v8 }
 0x155   : > { %1473 = vmatpush.bf16.msra.mxu2 %v382_v1 }
 0x163   : > { %2034 = vmatmul.msk.bf16.gmra.mxu0 %vm4072_vm3, %v377_v13 }
 0x164   : > { %2043 = vmatmul.msk.bf16.gmra.mxu3 %vm4072_vm3, %v386_v14 }
 0x173   : > { %2035 = vmatmul.msk.bf16.gmra.mxu0 %vm4072_vm3, %v378_v23 }
 0x174   : > { %2044 = vmatmul.msk.bf16.gmra.mxu3 %vm4072_vm3, %v387_v26 }
 0x183   : > { %2036 = vmatmul.msk.bf16.gmra.mxu0 %vm4072_vm3, %v379_v20 }
 0x184   : > { %2045 = vmatmul.msk.bf16.gmra.mxu3 %vm4072_vm3, %v388_v32 }
 0x193   : > { %2037 = vmatmul.msk.bf16.gmra.mxu0 %vm4072_vm3, %v380_v17 }
 0x194   : > { %2046 = vmatmul.msk.bf16.gmra.mxu3 %vm4072_vm3, %v389_v29 }
 0x1b0   : > { %v464_v34 = vpop.f32.mrf.mxu0  ;;  %v499_v35 = vpop.f32.mrf.mxu1 }
 0x1b1   : > { %v544_v36 = vmul.f32 2.0, %v464_v34  ;;  %v558_v37 = vmul.f32 2.0, %v499_v35 }
 0x1b3   : > { %v2481_v38 = vsub.f32 %v558_v37, %v2478_v33  ;;  %v2484_v39 = vsub.f32 %v544_v36, %v2478_v33 }
 0x1b5   : > { %v655_v40 = vsel %vm612_vm4, %v2481_v38, -inf  ;;  %v613_v41 = vsel %vm612_vm4, %v2484_v39, -inf }
 0x1b6   : > { %656 = vmax.xlane.f32.xlu2 %v655_v40  ;;  %614 = vmax.xlane.f32.xlu0 %v613_v41 }
 0x1b7   : > { %v509_v42 = vpop.f32.mrf.mxu3 }
 0x1b8   : > { %v562_v43 = vmul.f32 2.0, %v509_v42  ;;  %v466_v44 = vpop.f32.mrf.mxu0  ;;  %v501_v45 = vpop.f32.mrf.mxu1 }
 0x1b9   : > { %v545_v48 = vmul.f32 2.0, %v466_v44  ;;  %v559_v57 = vmul.f32 2.0, %v501_v45 }
 0x1ba   : > { %v2491_v46 = vsub.f32 %v562_v43, %v2478_v33 }
 0x1bb   : > { %v2496_v53 = vsub.f32 %v545_v48, %v2478_v33  ;;  %v2509_v0 = vsub.f32 %v559_v57, %v2478_v33 }
 0x1bc   : > { %v667_v47 = vsel %vm612_vm4, %v2491_v46, -inf }
 0x1bd   : > { %v616_v58 = vsel %vm612_vm4, %v2496_v53, -inf  ;;  %v658_v6 = vsel %vm612_vm4, %v2509_v0, -inf }
 0x1be   : > { %668 = vmax.xlane.f32.xlu0 %v667_v47 }
 0x1bf   : > { %v511_v49 = vpop.f32.mrf.mxu3 }
 0x1c0   : > { %v563_v50 = vmul.f32 2.0, %v511_v49  ;;  %v469_v51 = vpop.f32.mrf.mxu0  ;;  %v504_v52 = vpop.f32.mrf.mxu1 }
 0x1c1   : > { %v546_v55 = vmul.f32 2.0, %v469_v51  ;;  %v560_v1 = vmul.f32 2.0, %v504_v52 }
 0x1c2   : > { %v2499_v54 = vsub.f32 %v563_v50, %v2478_v33 }
 0x1c3   : > { %v2506_v62 = vsub.f32 %v546_v55, %v2478_v33  ;;  %v2524_v8 = vsub.f32 %v560_v1, %v2478_v33 }
 0x1c4   : > { %v670_v56 = vsel %vm612_vm4, %v2499_v54, -inf }
 0x1c5   : > { %671 = vmax.xlane.f32.xlu1 %v670_v56  ;;  %v619_v5 = vsel %vm612_vm4, %v2506_v62, -inf  ;;  %v661_v13 = vsel %vm612_vm4, %v2524_v8, -inf }
 0x1c6   : > { %617 = vmax.xlane.f32.xlu0 %v616_v58 }
 0x1c7   : > { %v514_v59 = vpop.f32.mrf.mxu3 }
 0x1c8   : > { %v564_v60 = vmul.f32 2.0, %v514_v59  ;;  %v471_v61 = vpop.f32.mrf.mxu0  ;;  %v506_v63 = vpop.f32.mrf.mxu1 }
 0x1c9   : > { %v561_v3 = vmul.f32 2.0, %v506_v63  ;;  %v547_v15 = vmul.f32 2.0, %v471_v61 }
 0x1ca   : > { %v2512_v2 = vsub.f32 %v564_v60, %v2478_v33 }
 0x1cb   : > { %v2521_v7 = vsub.f32 %v561_v3, %v2478_v33  ;;  %v2536_v20 = vsub.f32 %v547_v15, %v2478_v33 }
 0x1cc   : > { %v673_v4 = vsel %vm612_vm4, %v2512_v2, -inf }
 0x1cd   : > { %674 = vmax.xlane.f32.xlu2 %v673_v4  ;;  %620 = vmax.xlane.f32.xlu1 %v619_v5  ;;  %v664_v12 = vsel %vm612_vm4, %v2521_v7, -inf  ;;  %v622_v24 = vsel %vm612_vm4, %v2536_v20, -inf }
 0x1ce   : > { %659 = vmax.xlane.f32.xlu0 %v658_v6 }
 0x1cf   : > { %v516_v9 = vpop.f32.mrf.mxu3 }
 0x1d0   : > { %v565_v10 = vmul.f32 2.0, %v516_v9  ;;  %v474_v11 = vpop.f32.mrf.mxu0 }
 0x1d1   : > { %v548_v16 = vmul.f32 2.0, %v474_v11 }
 0x1d2   : > { %v2531_v14 = vsub.f32 %v565_v10, %v2478_v33 }
 0x1d3   : > { %v2539_v21 = vsub.f32 %v548_v16, %v2478_v33 }
 0x1d4   : > { %v676_v17 = vsel %vm612_vm4, %v2531_v14, -inf }
 0x1d5   : > { %665 = vmax.xlane.f32.xlu2 %v664_v12  ;;  %662 = vmax.xlane.f32.xlu1 %v661_v13  ;;  %v625_v25 = vsel %vm612_vm4, %v2539_v21, -inf }
 0x1d6   : > { %677 = vmax.xlane.f32.xlu0 %v676_v17 }
 0x1d7   : > { %v519_v18 = vpop.f32.mrf.mxu3 }
 0x1d8   : > { %v476_v19 = vpop.f32.mrf.mxu0  ;;  %v566_v22 = vmul.f32 2.0, %v519_v18 }
 0x1d9   : > { %v549_v23 = vmul.f32 2.0, %v476_v19 }
 0x1da   : > { %v2546_v28 = vsub.f32 %v566_v22, %v2478_v33 }
 0x1db   : > { %v2549_v29 = vsub.f32 %v549_v23, %v2478_v33 }
 0x1dc   : > { %v679_v34 = vsel %vm612_vm4, %v2546_v28, -inf }
 0x1dd   : > { %623 = vmax.xlane.f32.xlu1 %v622_v24  ;;  %626 = vmax.xlane.f32.xlu2 %v625_v25  ;;  %v628_v35 = vsel %vm612_vm4, %v2549_v29, -inf }
 0x1df   : > { %v521_v26 = vpop.f32.mrf.mxu3 }
 0x1e0   : > { %v479_v27 = vpop.f32.mrf.mxu0  ;;  %v567_v32 = vmul.f32 2.0, %v521_v26 }
 0x1e1   : > { %v550_v30 = vmul.f32 2.0, %v479_v27 }
 0x1e2   : > { %v2561_v42 = vsub.f32 %v567_v32, %v2478_v33 }
 0x1e3   : > { %v2552_v31 = vsub.f32 %v550_v30, %v2478_v33 }
 0x1e4   : > { %v682_v47 = vsel %vm612_vm4, %v2561_v42, -inf }
 0x1e5   : > { %680 = vmax.xlane.f32.xlu1 %v679_v34  ;;  %629 = vmax.xlane.f32.xlu2 %v628_v35  ;;  %v631_v36 = vsel %vm612_vm4, %v2552_v31, -inf }
 0x1e6   : > { %632 = vmax.xlane.f32.xlu0 %v631_v36 }
 0x1e7   : > { %v524_v37 = vpop.f32.mrf.mxu3 }
 0x1e8   : > { %v568_v40 = vmul.f32 2.0, %v524_v37  ;;  %v481_v41 = vpop.f32.mrf.mxu0 }
 0x1e9   : > { %v551_v43 = vmul.f32 2.0, %v481_v41 }
 0x1ea   : > { %v2564_v44 = vsub.f32 %v568_v40, %v2478_v33 }
 0x1eb   : > { %v2567_v45 = vsub.f32 %v551_v43, %v2478_v33 }
 0x1ec   : > { %v685_v48 = vsel %vm612_vm4, %v2564_v44, -inf }
 0x1ed   : > { %683 = vmax.xlane.f32.xlu2 %v682_v47  ;;  %v634_v49 = vsel %vm612_vm4, %v2567_v45, -inf }
 0x1ee   : > { %686 = vmax.xlane.f32.xlu0 %v685_v48  ;;  %635 = vmax.xlane.f32.xlu1 %v634_v49 }
 0x1ef   : > { %v526_v50 = vpop.f32.mrf.mxu3 }
 0x1f0   : > { %v569_v51 = vmul.f32 2.0, %v526_v50  ;;  %v484_v52 = vpop.f32.mrf.mxu0 }
 0x1f1   : > { %v552_v55 = vmul.f32 2.0, %v484_v52 }
 0x1f2   : > { %v2576_v56 = vsub.f32 %v569_v51, %v2478_v33 }
 0x1f3   : > { %v2579_v57 = vsub.f32 %v552_v55, %v2478_v33 }
 0x1f4   : > { %v688_v58 = vsel %vm612_vm4, %v2576_v56, -inf }
 0x1f5   : > { %v637_v59 = vsel %vm612_vm4, %v2579_v57, -inf }
 0x1f6   : > { %689 = vmax.xlane.f32.xlu1 %v688_v58  ;;  %638 = vmax.xlane.f32.xlu2 %v637_v59 }
 0x1f7   : > { %v529_v60 = vpop.f32.mrf.mxu3 }
 0x1f8   : > { %v570_v61 = vmul.f32 2.0, %v529_v60  ;;  %v486_v63 = vpop.f32.mrf.mxu0 }
 0x1f9   : > { %v553_v1 = vmul.f32 2.0, %v486_v63 }
 0x1fa   : > { %v2586_v3 = vsub.f32 %v570_v61, %v2478_v33 }
 0x1fb   : > { %v2589_v4 = vsub.f32 %v553_v1, %v2478_v33 }
 0x1fc   : > { %v691_v5 = vsel %vm612_vm4, %v2586_v3, -inf }
 0x1fd   : > { %v640_v6 = vsel %vm612_vm4, %v2589_v4, -inf }
 0x1fe   : > { %692 = vmax.xlane.f32.xlu2 %v691_v5  ;;  %641 = vmax.xlane.f32.xlu0 %v640_v6 }
 0x1ff   : > { %v531_v9 = vpop.f32.mrf.mxu3 }
 0x200   : > { %v571_v10 = vmul.f32 2.0, %v531_v9  ;;  %v489_v11 = vpop.f32.mrf.mxu0 }
 0x201   : > { %v554_v12 = vmul.f32 2.0, %v489_v11 }
 0x202   : > { %v2596_v13 = vsub.f32 %v571_v10, %v2478_v33 }
 0x203   : > { %v2599_v15 = vsub.f32 %v554_v12, %v2478_v33 }
 0x204   : > { %v694_v16 = vsel %vm612_vm4, %v2596_v13, -inf }
 0x205   : > { %v643_v17 = vsel %vm612_vm4, %v2599_v15, -inf }
 0x206   : > { %695 = vmax.xlane.f32.xlu0 %v694_v16  ;;  %644 = vmax.xlane.f32.xlu1 %v643_v17 }
 0x207   : > { %v534_v18 = vpop.f32.mrf.mxu3 }
 0x208   : > { %v572_v19 = vmul.f32 2.0, %v534_v18  ;;  %v491_v22 = vpop.f32.mrf.mxu0 }
 0x209   : > { %v555_v23 = vmul.f32 2.0, %v491_v22 }
 0x20a   : > { %v2606_v24 = vsub.f32 %v572_v19, %v2478_v33 }
 0x20b   : > { %v2609_v25 = vsub.f32 %v555_v23, %v2478_v33 }
 0x20c   : > { %v697_v26 = vsel %vm612_vm4, %v2606_v24, -inf }
 0x20d   : > { %v646_v27 = vsel %vm612_vm4, %v2609_v25, -inf }
 0x20e   : > { %698 = vmax.xlane.f32.xlu1 %v697_v26  ;;  %647 = vmax.xlane.f32.xlu2 %v646_v27 }
 0x20f   : > { %v536_v30 = vpop.f32.mrf.mxu3 }
 0x210   : > { %v573_v32 = vmul.f32 2.0, %v536_v30  ;;  %v494_v34 = vpop.f32.mrf.mxu0 }
 0x211   : > { %v556_v35 = vmul.f32 2.0, %v494_v34 }
 0x212   : > { %v2616_v36 = vsub.f32 %v573_v32, %v2478_v33 }
 0x213   : > { %v2619_v37 = vsub.f32 %v556_v35, %v2478_v33 }
 0x214   : > { %v700_v40 = vsel %vm612_vm4, %v2616_v36, -inf }
 0x215   : > { %v649_v41 = vsel %vm612_vm4, %v2619_v37, -inf }
 0x216   : > { %701 = vmax.xlane.f32.xlu2 %v700_v40  ;;  %650 = vmax.xlane.f32.xlu0 %v649_v41 }
 0x217   : > { %v539_v43 = vpop.f32.mrf.mxu3 }
 0x218   : > { %v496_v47 = vpop.f32.mrf.mxu0  ;;  %v574_v48 = vmul.f32 2.0, %v539_v43 }
 0x219   : > { %v557_v49 = vmul.f32 2.0, %v496_v47 }
 0x21a   : > { %v2626_v50 = vsub.f32 %v574_v48, %v2478_v33 }
 0x21b   : > { %v2629_v51 = vsub.f32 %v557_v49, %v2478_v33 }
 0x21c   : > { %v703_v52 = vsel %vm612_vm4, %v2626_v50, -inf }
 0x21d   : > { %v652_v55 = vsel %vm612_vm4, %v2629_v51, -inf }
 0x21e   : > { %704 = vmax.xlane.f32.xlu0 %v703_v52  ;;  %653 = vmax.xlane.f32.xlu1 %v652_v55 }
 0x21f   : > { %v541_v58 = vpop.f32.mrf.mxu3 }
 0x220   : > { %v575_v59 = vmul.f32 2.0, %v541_v58 }
 0x222   : > { %v2636_v60 = vsub.f32 %v575_v59, %v2478_v33 }
 0x224   : > { %v706_v61 = vsel %vm612_vm4, %v2636_v60, -inf }
 0x226   : > { %707 = vmax.xlane.f32.xlu1 %v706_v61 }
 0x229   : > { %v657_v63 = vpop.xlane.xlu2 %656  ;;  %v615_v1 = vpop.xlane.xlu0 %614 }
 0x22a   : > { %v723_v5 = vsub.f32 %v2481_v38, %v657_v63  ;;  %v709_v6 = vsub.f32 %v2484_v39, %v615_v1 }
 0x22c   : > { %v769_v9 = vmul.f32 1.442695, %v723_v5  ;;  %v741_v10 = vmul.f32 1.442695, %v709_v6 }
 0x22e   : > { %2112 = vpow2.f32 %v769_v9 }
 0x22f   : > { %2114 = vpow2.f32 %v741_v10 }
 0x231   : > { %v669_v11 = vpop.xlane.xlu0 %668 }
 0x232   : > { %v727_v12 = vsub.f32 %v2491_v46, %v669_v11 }
 0x234   : > { %v2643_v16 = vpop.eup %2112  ;;  %v777_v33 = vmul.f32 1.442695, %v727_v12 }
 0x235   : > { %4074 = vst [vmem:[#allocation7_spill] sm:$0xff] %v2643_v16  ;;  %v2645_v17 = vpop.eup %2114  ;;  %v847_v18 = vsel %vm612_vm4, %v2643_v16, 0.0 }
 0x236   : > { %2116 = vpow2.f32 %v777_v33  ;;  %v805_v38 = vsel %vm612_vm4, %v2645_v17, 0.0  ;;  %848 = vadd.xlane.f32.xlu1 %v847_v18 }
 0x237   : > { %806 = vadd.xlane.f32.xlu2 %v805_v38 }
 0x238   : > { %v672_v39 = vpop.xlane.xlu1 %671 }
 0x239   : > { %v728_v19 = vsub.f32 %v2499_v54, %v672_v39  ;;  %v618_v22 = vpop.xlane.xlu0 %617 }
 0x23a   : > { %v710_v46 = vsub.f32 %v2496_v53, %v618_v22 }
 0x23b   : > { %v779_v23 = vmul.f32 1.442695, %v728_v19 }
 0x23c   : > { %v2653_v26 = vpop.eup %2116  ;;  %v743_v27 = vmul.f32 1.442695, %v710_v46 }
 0x23d   : > { %2118 = vpow2.f32 %v779_v23  ;;  %v859_v30 = vsel %vm612_vm4, %v2653_v26, 0.0 }
 0x23e   : > { %2120 = vpow2.f32 %v743_v27  ;;  %860 = vadd.xlane.f32.xlu1 %v859_v30 }
 0x240   : > { %v675_v32 = vpop.xlane.xlu2 %674  ;;  %v621_v34 = vpop.xlane.xlu1 %620 }
 0x241   : > { %v729_v35 = vsub.f32 %v2512_v2, %v675_v32  ;;  %v711_v40 = vsub.f32 %v2506_v62, %v621_v34  ;;  %v2659_v54 = vpop.xlane.xlu0 %659 }
 0x243   : > { %v2661_v41 = vpop.eup %2118  ;;  %v781_v53 = vmul.f32 1.442695, %v729_v35  ;;  %v745_v43 = vmul.f32 1.442695, %v711_v40 }
 0x244   : > { %v2663_v47 = vpop.eup %2120  ;;  %v862_v48 = vsel %vm612_vm4, %v2661_v41, 0.0 }
 0x245   : > { %2122 = vpow2.f32 %v781_v53  ;;  %863 = vadd.xlane.f32.xlu2 %v862_v48  ;;  %v808_v49 = vsel %vm612_vm4, %v2663_v47, 0.0 }
 0x246   : > { %2124 = vpow2.f32 %v745_v43  ;;  %809 = vadd.xlane.f32.xlu0 %v808_v49 }
 0x248   : > { %v666_v2 = vpop.xlane.xlu2 %665  ;;  %v663_v62 = vpop.xlane.xlu1 %662 }
 0x249   : > { %v726_v52 = vsub.f32 %v2521_v7, %v666_v2  ;;  %v725_v55 = vsub.f32 %v2524_v8, %v663_v62  ;;  %v678_v58 = vpop.xlane.xlu0 %677 }
 0x24a   : > { %v730_v59 = vsub.f32 %v2531_v14, %v678_v58 }
 0x24b   : > { %v2672_v61 = vpop.eup %2122  ;;  %v775_v63 = vmul.f32 1.442695, %v726_v52  ;;  %v773_v1 = vmul.f32 1.442695, %v725_v55 }
 0x24c   : > { %v2674_v5 = vpop.eup %2124  ;;  %v783_v6 = vmul.f32 1.442695, %v730_v59  ;;  %v865_v10 = vsel %vm612_vm4, %v2672_v61, 0.0 }
 0x24d   : > { %2126 = vpow2.f32 %v775_v63  ;;  %v811_v9 = vsel %vm612_vm4, %v2674_v5, 0.0 }
 0x24e   : > { %2128 = vpow2.f32 %v773_v1  ;;  %812 = vadd.xlane.f32.xlu1 %v811_v9  ;;  %866 = vadd.xlane.f32.xlu0 %v865_v10 }
 0x24f   : > { %2130 = vpow2.f32 %v783_v6 }
 0x250   : > { %v624_v7 = vpop.xlane.xlu1 %623  ;;  %v627_v8 = vpop.xlane.xlu2 %626 }
 0x251   : > { %v712_v14 = vsub.f32 %v2536_v20, %v624_v7  ;;  %v713_v11 = vsub.f32 %v2539_v21, %v627_v8 }
 0x253   : > { %v2682_v12 = vpop.eup %2126  ;;  %v747_v33 = vmul.f32 1.442695, %v712_v14  ;;  %v749_v18 = vmul.f32 1.442695, %v713_v11 }
 0x254   : > { %v2684_v38 = vpop.eup %2128  ;;  %v856_v22 = vsel %vm612_vm4, %v2682_v12, 0.0 }
 0x255   : > { %v2686_v39 = vpop.eup %2130  ;;  %2132 = vpow2.f32 %v747_v33  ;;  %v853_v19 = vsel %vm612_vm4, %v2684_v38, 0.0 }
 0x256   : > { %2134 = vpow2.f32 %v749_v18  ;;  %854 = vadd.xlane.f32.xlu2 %v853_v19  ;;  %857 = vadd.xlane.f32.xlu0 %v856_v22  ;;  %v868_v20 = vsel %vm612_vm4, %v2686_v39, 0.0 }
 0x257   : > { %869 = vadd.xlane.f32.xlu1 %v868_v20 }
 0x258   : > { %v681_v21 = vpop.xlane.xlu1 %680  ;;  %v630_v46 = vpop.xlane.xlu2 %629 }
 0x259   : > { %v731_v23 = vsub.f32 %v2546_v28, %v681_v21  ;;  %v714_v27 = vsub.f32 %v2549_v29, %v630_v46  ;;  %v633_v30 = vpop.xlane.xlu0 %632 }
 0x25a   : > { %v715_v53 = vsub.f32 %v2552_v31, %v633_v30 }
 0x25b   : > { %v2696_v32 = vpop.eup %2132  ;;  %v785_v34 = vmul.f32 1.442695, %v731_v23  ;;  %v751_v35 = vmul.f32 1.442695, %v714_v27 }
 0x25c   : > { %v2698_v40 = vpop.eup %2134  ;;  %v814_v43 = vsel %vm612_vm4, %v2696_v32, 0.0  ;;  %v753_v28 = vmul.f32 1.442695, %v715_v53 }
 0x25d   : > { %2136 = vpow2.f32 %v785_v34  ;;  %v817_v48 = vsel %vm612_vm4, %v2698_v40, 0.0 }
 0x25e   : > { %2138 = vpow2.f32 %v751_v35  ;;  %815 = vadd.xlane.f32.xlu2 %v814_v43  ;;  %818 = vadd.xlane.f32.xlu0 %v817_v48 }
 0x25f   : > { %2140 = vpow2.f32 %v753_v28 }
 0x260   : > { %v684_v29 = vpop.xlane.xlu2 %683 }
 0x261   : > { %v732_v49 = vsub.f32 %v2561_v42, %v684_v29  ;;  %v687_v2 = vpop.xlane.xlu0 %686  ;;  %v636_v62 = vpop.xlane.xlu1 %635 }
 0x262   : > { %v733_v52 = vsub.f32 %v2564_v44, %v687_v2  ;;  %v716_v58 = vsub.f32 %v2567_v45, %v636_v62 }
 0x263   : > { %v2707_v55 = vpop.eup %2136  ;;  %v787_v31 = vmul.f32 1.442695, %v732_v49 }
 0x264   : > { %4075 = vst [vmem:[#allocation8_spill] sm:$0xff] %v2707_v55  ;;  %v2710_v59 = vpop.eup %2138  ;;  %v789_v63 = vmul.f32 1.442695, %v733_v52  ;;  %v871_v1 = vsel %vm612_vm4, %v2707_v55, 0.0  ;;  %v755_v44 = vmul.f32 1.442695, %v716_v58 }
 0x265   : > { %2142 = vpow2.f32 %v787_v31  ;;  %v820_v42 = vsel %vm612_vm4, %v2710_v59, 0.0  ;;  %v2716_v10 = vpop.eup %2140 }
 0x266   : > { %2144 = vpow2.f32 %v789_v63  ;;  %872 = vadd.xlane.f32.xlu2 %v871_v1  ;;  %821 = vadd.xlane.f32.xlu1 %v820_v42  ;;  %v823_v19 = vsel %vm612_vm4, %v2716_v10, 0.0 }
 0x267   : > { %2146 = vpow2.f32 %v755_v44 }
 0x269   : > { %v690_v6 = vpop.xlane.xlu1 %689  ;;  %v639_v9 = vpop.xlane.xlu2 %638 }
 0x26a   : > { %v734_v45 = vsub.f32 %v2576_v56, %v690_v6  ;;  %v717_v7 = vsub.f32 %v2579_v57, %v639_v9 }
 0x26b   : > { %v2720_v8 = vpop.eup %2142 }
 0x26c   : > { %v2722_v14 = vpop.eup %2144  ;;  %v791_v11 = vmul.f32 1.442695, %v734_v45  ;;  %v757_v33 = vmul.f32 1.442695, %v717_v7  ;;  %v874_v18 = vsel %vm612_vm4, %v2720_v8, 0.0 }
 0x26d   : > { %4076 = vst [vmem:[#allocation9_spill] sm:$0xff] %v2722_v14  ;;  %875 = vadd.xlane.f32.xlu0 %v874_v18  ;;  %v877_v22 = vsel %vm612_vm4, %v2722_v14, 0.0  ;;  %v2730_v56 = vpop.eup %2146 }
 0x26e   : > { %2148 = vpow2.f32 %v791_v11  ;;  %824 = vadd.xlane.f32.xlu2 %v823_v19  ;;  %878 = vadd.xlane.f32.xlu1 %v877_v22  ;;  %v826_v34 = vsel %vm612_vm4, %v2730_v56, 0.0 }
 0x26f   : > { %2150 = vpow2.f32 %v757_v33 }
 0x271   : > { %v693_v57 = vpop.xlane.xlu2 %692  ;;  %v642_v20 = vpop.xlane.xlu0 %641 }
 0x272   : > { %v735_v21 = vsub.f32 %v2586_v3, %v693_v57  ;;  %v718_v46 = vsub.f32 %v2589_v4, %v642_v20 }
 0x274   : > { %v2734_v23 = vpop.eup %2148  ;;  %v793_v27 = vmul.f32 1.442695, %v735_v21  ;;  %v759_v30 = vmul.f32 1.442695, %v718_v46 }
 0x275   : > { %4077 = vst [vmem:[#allocation10_spill] sm:$0xff] %v2734_v23  ;;  %v2738_v35 = vpop.eup %2150  ;;  %827 = vadd.xlane.f32.xlu0 %v826_v34  ;;  %v880_v53 = vsel %vm612_vm4, %v2734_v23, 0.0 }
 0x276   : > { %4078 = vst [vmem:[#allocation11_spill] sm:$0xff] %v2738_v35  ;;  %2152 = vpow2.f32 %v793_v27  ;;  %881 = vadd.xlane.f32.xlu2 %v880_v53  ;;  %v829_v3 = vsel %vm612_vm4, %v2738_v35, 0.0 }
 0x277   : > { %2154 = vpow2.f32 %v759_v30  ;;  %830 = vadd.xlane.f32.xlu1 %v829_v3  ;;  %v724_v3 = vsub.f32 %v2509_v0, %v2659_v54 }
 0x279   : > { %v696_v4 = vpop.xlane.xlu0 %695  ;;  %v645_v43 = vpop.xlane.xlu1 %644 }
 0x27a   : > { %v736_v48 = vsub.f32 %v2596_v13, %v696_v4  ;;  %v719_v28 = vsub.f32 %v2599_v15, %v645_v43 }
 0x27c   : > { %v2746_v29 = vpop.eup %2152  ;;  %v795_v49 = vmul.f32 1.442695, %v736_v48  ;;  %v761_v2 = vmul.f32 1.442695, %v719_v28 }
 0x27d   : > { %4079 = vst [vmem:[#allocation12_spill] sm:$0xff] %v2746_v29  ;;  %v2748_v62 = vpop.eup %2154  ;;  %v883_v52 = vsel %vm612_vm4, %v2746_v29, 0.0 }
 0x27e   : > { %4080 = vst [vmem:[#allocation13_spill] sm:$0xff] %v2748_v62  ;;  %2156 = vpow2.f32 %v795_v49  ;;  %v832_v31 = vsel %vm612_vm4, %v2748_v62, 0.0  ;;  %884 = vadd.xlane.f32.xlu0 %v883_v52 }
 0x27f   : > { %2158 = vpow2.f32 %v761_v2  ;;  %833 = vadd.xlane.f32.xlu2 %v832_v31 }
 0x281   : > { %v699_v58 = vpop.xlane.xlu1 %698  ;;  %v648_v13 = vpop.xlane.xlu2 %647 }
 0x282   : > { %v737_v15 = vsub.f32 %v2606_v24, %v699_v58  ;;  %v720_v63 = vsub.f32 %v2609_v25, %v648_v13 }
 0x284   : > { %v2756_v1 = vpop.eup %2156  ;;  %v797_v42 = vmul.f32 1.442695, %v737_v15  ;;  %v763_v44 = vmul.f32 1.442695, %v720_v63 }
 0x285   : > { %4081 = vst [vmem:[#allocation14_spill] sm:$0xff] %v2756_v1  ;;  %v2758_v6 = vpop.eup %2158  ;;  %v886_v9 = vsel %vm612_vm4, %v2756_v1, 0.0 }
 0x286   : > { %4082 = vst [vmem:[#allocation15_spill] sm:$0xff] %v2758_v6  ;;  %2160 = vpow2.f32 %v797_v42  ;;  %v835_v45 = vsel %vm612_vm4, %v2758_v6, 0.0  ;;  %887 = vadd.xlane.f32.xlu1 %v886_v9 }
 0x287   : > { %2162 = vpow2.f32 %v763_v44  ;;  %836 = vadd.xlane.f32.xlu0 %v835_v45 }
 0x289   : > { %v702_v7 = vpop.xlane.xlu2 %701  ;;  %v651_v24 = vpop.xlane.xlu0 %650 }
 0x28a   : > { %v738_v25 = vsub.f32 %v2616_v36, %v702_v7  ;;  %v721_v11 = vsub.f32 %v2619_v37, %v651_v24 }
 0x28c   : > { %v2766_v33 = vpop.eup %2160  ;;  %v799_v18 = vmul.f32 1.442695, %v738_v25  ;;  %v765_v19 = vmul.f32 1.442695, %v721_v11 }
 0x28d   : > { %4083 = vst [vmem:[#allocation16_spill] sm:$0xff] %v2766_v33  ;;  %v2768_v22 = vpop.eup %2162  ;;  %v889_v57 = vsel %vm612_vm4, %v2766_v33, 0.0 }
 0x28e   : > { %4084 = vst [vmem:[#allocation17_spill] sm:$0xff] %v2768_v22  ;;  %2164 = vpow2.f32 %v799_v18  ;;  %890 = vadd.xlane.f32.xlu2 %v889_v57  ;;  %v838_v20 = vsel %vm612_vm4, %v2768_v22, 0.0 }
 0x28f   : > { %2166 = vpow2.f32 %v765_v19  ;;  %839 = vadd.xlane.f32.xlu1 %v838_v20 }
 0x291   : > { %v705_v21 = vpop.xlane.xlu0 %704  ;;  %v654_v36 = vpop.xlane.xlu1 %653 }
 0x292   : > { %v739_v37 = vsub.f32 %v2626_v50, %v705_v21  ;;  %v722_v46 = vsub.f32 %v2629_v51, %v654_v36  ;;  %v771_v50 = vmul.f32 1.442695, %v724_v3 }
 0x294   : > { %v2776_v27 = vpop.eup %2164  ;;  %v801_v30 = vmul.f32 1.442695, %v739_v37  ;;  %v767_v34 = vmul.f32 1.442695, %v722_v46 }
 0x295   : > { %4085 = vst [vmem:[#allocation18_spill] sm:$0xff] %v2776_v27  ;;  %v2778_v53 = vpop.eup %2166  ;;  %v892_v4 = vsel %vm612_vm4, %v2776_v27, 0.0 }
 0x296   : > { %4086 = vst [vmem:[#allocation19_spill] sm:$0xff] %v2778_v53  ;;  %2168 = vpow2.f32 %v801_v30  ;;  %893 = vadd.xlane.f32.xlu0 %v892_v4  ;;  %v841_v43 = vsel %vm612_vm4, %v2778_v53, 0.0 }
 0x297   : > { %2170 = vpow2.f32 %v767_v34  ;;  %842 = vadd.xlane.f32.xlu2 %v841_v43 }
 0x298   : > { %2172 = vpow2.f32 %v771_v50 }
 0x299   : > { %v708_v51 = vpop.xlane.xlu1 %707 }
 0x29a   : > { %v740_v48 = vsub.f32 %v2636_v60, %v708_v51 }
 0x29c   : > { %v2787_v28 = vpop.eup %2168  ;;  %v803_v49 = vmul.f32 1.442695, %v740_v48 }
 0x29d   : > { %4087 = vst [vmem:[#allocation20_spill] sm:$0xff] %v2787_v28  ;;  %v2789_v2 = vpop.eup %2170  ;;  %v895_v0 = vsel %vm612_vm4, %v2787_v28, 0.0 }
 0x29e   : > { %4088 = vst [vmem:[#allocation21_spill] sm:$0xff] %v2789_v2  ;;  %2174 = vpow2.f32 %v803_v49  ;;  %896 = vadd.xlane.f32.xlu1 %v895_v0  ;;  %v844_v54 = vsel %vm612_vm4, %v2789_v2, 0.0  ;;  %v2795_v52 = vpop.eup %2172 }
 0x29f   : > { %845 = vadd.xlane.f32.xlu0 %v844_v54  ;;  %4089 = vst [vmem:[#allocation22_spill] sm:$0xff] %v2795_v52  ;;  %v850_v58 = vsel %vm612_vm4, %v2795_v52, 0.0 }
 0x2a4   : > { %v2797_v31 = vpop.eup %2174 }
 0x2a5   : > { %4090 = vst [vmem:[#allocation23_spill] sm:$0xff] %v2797_v31  ;;  %v898_v60 = vsel %vm612_vm4, %v2797_v31, 0.0 }
 0x2a6   : > { %899 = vadd.xlane.f32.xlu2 %v898_v60 }
 0x2a7   : > { %851 = vadd.xlane.f32.xlu0 %v850_v58 }
 0x2a9   : > { %v2807_v63 = vpop.xlane.xlu1 %848 }
 0x2aa   : > { %v2803_v13 = vpop.xlane.xlu2 %806  ;;  %2176 = vrcp.f32 %v2807_v63  ;;  %v1122_v3 = vand.u32 2147483648, %v2807_v63  ;;  %vm1116_vm5 = vweird.f32 %v2807_v63 }
 0x2ab   : > { %2178 = vrcp.f32 %v2803_v13  ;;  %v912_v34 = vand.u32 2147483648, %v2803_v13  ;;  %vm906_vm6 = vweird.f32 %v2803_v13 }
 0x2ac   : > { %v2871_v31 = vor.u32 1.1754944e-38, %v1122_v3 }
 0x2ad   : > { %v2869_v51 = vor.u32 1.1754944e-38, %v912_v34 }
 0x2b0   : > { %v2816_v9 = vpop.eup %2176 }
 0x2b1   : > { %v2818_v45 = vpop.xlane.xlu1 %860  ;;  %v2820_v7 = vpop.eup %2178  ;;  %v1112_v24 = vmul.f32 %v2816_v9, %v2807_v63  ;;  %vm1117_vm7 = vweird.f32 %v2816_v9 }
 0x2b2   : > { %v902_v19 = vmul.f32 %v2820_v7, %v2803_v13  ;;  %v1182_v48 = vand.u32 2147483648, %v2818_v45  ;;  %vm907_vm8 = vweird.f32 %v2820_v7  ;;  %vm2883_vm9 = vmor %vm1116_vm5, %vm1117_vm7  ;;  %vm1176_vm13 = vweird.f32 %v2818_v45 }
 0x2b3   : > { %v1113_v57 = vsub.f32 1.0, %v1112_v24  ;;  %v910_v24 = vand.u32 2147483647, %v2803_v13  ;;  %vm2918_vm0 = vmor %vm906_vm6, %vm907_vm8 }
 0x2b4   : > { %v903_v36 = vsub.f32 1.0, %v902_v19  ;;  %v2877_v28 = vor.u32 1.1754944e-38, %v1182_v48 }
 0x2b5   : > { %v1114_v46 = vmul.f32 %v2816_v9, %v1113_v57  ;;  %vm2889_vm10 = vcmp.eq.f32.partialorder %v910_v24, 8.507059e+37 }
 0x2b6   : > { %v904_v54 = vmul.f32 %v2820_v7, %v903_v36 }
 0x2b7   : > { %v2864_v19 = vadd.f32 %v2816_v9, %v1114_v46 }
 0x2b8   : > { %v2810_v42 = vpop.xlane.xlu2 %863  ;;  %v905_v46 = vadd.f32 %v2820_v7, %v904_v54 }
 0x2b9   : > { %v2805_v15 = vpop.xlane.xlu0 %809 }
 0x2ba   : > { %2180 = vrcp.f32 %v2805_v15  ;;  %vm921_vm14 = vweird.f32 %v2805_v15  ;;  %v925_v48 = vand.u32 2147483647, %v2805_v15  ;;  %v927_v27 = vand.u32 2147483648, %v2805_v15 }
 0x2bb   : > { %2182 = vrcp.f32 %v2818_v45 }
 0x2bc   : > { %vm926_vm8 = vcmp.eq.f32.partialorder %v925_v48, 8.507059e+37  ;;  %v928_v23 = vor.u32 1.1754944e-38, %v927_v27 }
 0x2c0   : > { %v2829_v18 = vpop.eup %2180 }
 0x2c1   : > { %v2812_v44 = vpop.xlane.xlu0 %866  ;;  %v917_v20 = vmul.f32 %v2829_v18, %v2805_v15  ;;  %v2837_v21 = vpop.eup %2182  ;;  %vm922_vm12 = vweird.f32 %v2829_v18 }
 0x2c2   : > { %v2847_v43 = vpop.xlane.xlu1 %812  ;;  %v1172_v60 = vmul.f32 %v2837_v21, %v2818_v45  ;;  %vm1177_vm11 = vweird.f32 %v2837_v21  ;;  %vm2930_vm2 = vmor %vm921_vm14, %vm922_vm12 }
 0x2c3   : > { %v918_v4 = vsub.f32 1.0, %v917_v20 }
 0x2c4   : > { %v1173_v3 = vsub.f32 1.0, %v1172_v60  ;;  %v1195_v60 = vand.u32 2147483647, %v2810_v42 }
 0x2c5   : > { %v919_v36 = vmul.f32 %v2829_v18, %v918_v4 }
 0x2c6   : > { %v1174_v1 = vmul.f32 %v2837_v21, %v1173_v3 }
 0x2c8   : > { %v1175_v53 = vadd.f32 %v2837_v21, %v1174_v1 }
 0x2c9   : > { %v2825_v25 = vpop.xlane.xlu2 %854  ;;  %v2827_v11 = vpop.xlane.xlu0 %857 }
 0x2ca   : > { %2184 = vrcp.f32 %v2825_v25  ;;  %v2905_v24 = vpop.xlane.xlu1 %869  ;;  %vm1146_vm5 = vweird.f32 %v2825_v25  ;;  %v1152_v13 = vand.u32 2147483648, %v2825_v25  ;;  %v1167_v3 = vand.u32 2147483648, %v2827_v11 }
 0x2cb   : > { %2186 = vrcp.f32 %v2827_v11  ;;  %vm1161_vm7 = vweird.f32 %v2827_v11 }
 0x2cc   : > { %2188 = vrcp.f32 %v2810_v42 }
 0x2d0   : > { %v2840_v37 = vpop.eup %2184 }
 0x2d1   : > { %v2843_v30 = vpop.eup %2186  ;;  %v1142_v50 = vmul.f32 %v2840_v37, %v2825_v25  ;;  %v2856_v0 = vpop.xlane.xlu2 %815  ;;  %vm1147_vm15 = vweird.f32 %v2840_v37 }
 0x2d2   : > { %v1157_v49 = vmul.f32 %v2843_v30, %v2827_v11  ;;  %v2867_v20 = vpop.eup %2188  ;;  %2190 = vrcp.f32 %v2856_v0  ;;  %vm1162_vm1 = vweird.f32 %v2843_v30  ;;  %vm2937_vm6 = vmor %vm1146_vm5, %vm1147_vm15  ;;  %v2944_v22 = vpop.xlane.xlu0 %818  ;;  %vm3002_vm5 = vcmp.eq.f32.partialorder %v1195_v60, 8.507059e+37 }
 0x2d3   : > { %v1143_v58 = vsub.f32 1.0, %v1142_v50  ;;  %v1180_v50 = vand.u32 2147483647, %v2818_v45  ;;  %2192 = vrcp.f32 %v2847_v43  ;;  %v1187_v54 = vmul.f32 %v2867_v20, %v2810_v42  ;;  %vm2953_vm12 = vmor %vm1161_vm7, %vm1162_vm1 }
 0x2d4   : > { %v1158_v57 = vsub.f32 1.0, %v1157_v49  ;;  %2194 = vrcp.f32 %v2812_v44  ;;  %vm2990_vm1 = vmor %vm1176_vm13, %vm1177_vm11  ;;  %vm936_vm13 = vweird.f32 %v2847_v43 }
 0x2d5   : > { %v1144_v4 = vmul.f32 %v2840_v37, %v1143_v58  ;;  %v1197_v58 = vand.u32 2147483648, %v2810_v42  ;;  %v1188_v2 = vsub.f32 1.0, %v1187_v54  ;;  %v1165_v54 = vand.u32 2147483647, %v2827_v11 }
 0x2d6   : > { %v1159_v49 = vmul.f32 %v2843_v30, %v1158_v57  ;;  %v920_v57 = vadd.f32 %v2829_v18, %v919_v36  ;;  %v909_v11 = vsel %vm2918_vm0, %v2820_v7, %v905_v46  ;;  %vm2973_vm14 = vcmp.eq.f32.partialorder %v1180_v50, 8.507059e+37 }
 0x2d7   : > { %v1145_v52 = vadd.f32 %v2840_v37, %v1144_v4  ;;  %v1153_v7 = vor.u32 1.1754944e-38, %v1152_v13  ;;  %v1168_v46 = vor.u32 1.1754944e-38, %v1167_v3  ;;  %2196 = vrcp.f32 %v2905_v24 }
 0x2d8   : > { %v2912_v29 = vpop.eup %2190  ;;  %v1160_v16 = vadd.f32 %v2843_v30, %v1159_v49  ;;  %v1150_v49 = vand.u32 2147483647, %v2825_v25  ;;  %v924_v14 = vsel %vm2930_vm2, %v2829_v18, %v920_v57  ;;  %v1189_v36 = vmul.f32 %v2867_v20, %v1188_v2 }
 0x2d9   : > { %v2926_v15 = vpop.eup %2192  ;;  %v2946_v6 = vpop.xlane.xlu2 %872  ;;  %v947_v25 = vmul.f32 %v2912_v29, %v2856_v0  ;;  %v1149_v18 = vsel %vm2937_vm6, %v2840_v37, %v1145_v52  ;;  %v929_v1 = vsel %vm926_vm8, %v928_v23, %v924_v14  ;;  %vm1166_vm0 = vcmp.eq.f32.partialorder %v1165_v54, 8.507059e+37 }
 0x2da   : > { %v2962_v35 = vpop.eup %2194  ;;  %v932_v27 = vmul.f32 %v2926_v15, %v2847_v43  ;;  %v1164_v48 = vsel %vm2953_vm12, %v2843_v30, %v1160_v16  ;;  %vm1151_vm15 = vcmp.eq.f32.partialorder %v1150_v49, 8.507059e+37  ;;  %v2979_v55 = vpop.xlane.xlu1 %821  ;;  %v914_v62 = vsel %vm2889_vm10, %v2869_v51, %v909_v11 }
 0x2db   : > { %v1202_v16 = vmul.f32 %v2962_v35, %v2812_v44  ;;  %v948_v52 = vsub.f32 1.0, %v947_v25  ;;  %v1154_v37 = vsel %vm1151_vm15, %v1153_v7, %v1149_v18  ;;  %v1169_v30 = vsel %vm1166_vm0, %v1168_v46, %v1164_v48 }
 0x2dc   : > { %vm1191_vm2 = vweird.f32 %v2810_v42  ;;  %v1198_v23 = vor.u32 1.1754944e-38, %v1197_v58  ;;  %v933_v2 = vsub.f32 1.0, %v932_v27  ;;  %v2996_v33 = vmul.f32 %v2663_v47, %v929_v1 }
 0x2dd   : > { %v1179_v51 = vsel %vm2990_vm1, %v2837_v21, %v1175_v53  ;;  %vm1192_vm10 = vweird.f32 %v2867_v20  ;;  %2198 = vrcp.f32 %v2979_v55  ;;  %v915_v45 = vmul.f32 %v2645_v17, %v914_v62  ;;  %v3018_v60 = vpop.eup %2196 }
 0x2de   : > { %v940_v58 = vand.u32 2147483647, %v2847_v43  ;;  %2200 = vrcp.f32 %v2944_v22  ;;  %v3013_v13 = vmul.f32 %v2684_v38, %v1154_v37  ;;  %v3016_v21 = vmul.f32 %v2682_v12, %v1169_v30  ;;  %vm3046_vm7 = vmor %vm1191_vm2, %vm1192_vm10 }
 0x2df   : > { %v1190_v3 = vadd.f32 %v2867_v20, %v1189_v36  ;;  %v942_v4 = vand.u32 2147483648, %v2847_v43  ;;  %v1203_v49 = vsub.f32 1.0, %v1202_v16  ;;  %v949_v17 = vmul.f32 %v2912_v29, %v948_v52 }
 0x2e0   : > { %v3010_v47 = vpop.xlane.xlu0 %875  ;;  %v4109_v54 = vand.u32 2147483647, %v2807_v63  ;;  %v934_v38 = vmul.f32 %v2926_v15, %v933_v2  ;;  %2202 = vrcp.f32 %v2946_v6  ;;  %v1389_v11 = vpack.c.bf16 %v2996_v33, %v915_v45 }
 0x2e1   : > { %v3031_v12 = vpop.xlane.xlu2 %824  ;;  %v1397_v53 = vpack.c.bf16 %v3016_v21, %v3013_v13  ;;  %vm1206_vm6 = vweird.f32 %v2812_v44  ;;  %v1212_v63 = vand.u32 2147483648, %v2812_v44  ;;  %v3040_v27 = vsel %vm612_vm4, %v915_v45, 0.0 }
 0x2e2   : > { %vm3025_vm11 = vcmp.eq.f32.partialorder %v4109_v54, 8.507059e+37  ;;  %vm3050_vm8 = vcmp.eq.f32.partialorder %v940_v58, 8.507059e+37  ;;  %v1210_v7 = vand.u32 2147483647, %v2812_v44  ;;  %v1217_v46 = vmul.f32 %v3018_v60, %v2905_v24  ;;  %v3077_v14 = vpop.xlane.xlu1 %878 }
 0x2e3   : > { %2093 = vxpose.binary.xlu1.c.b16.start [1/16] (narrow) %v1397_v53, %v1389_v11, 64  ;;  %v1184_v1 = vsel %vm2973_vm14, %v2877_v28, %v1179_v51  ;;  %v3060_v36 = vpop.eup %2198  ;;  %v1194_v42 = vsel %vm3046_vm7, %v2867_v20, %v1190_v3  ;;  %v1204_v62 = vmul.f32 %v2962_v35, %v1203_v49  ;;  %vm952_vm12 = vweird.f32 %v2912_v29 }
 0x2e4   : > { %v950_v16 = vadd.f32 %v2912_v29, %v949_v17  ;;  %v3068_v52 = vpop.eup %2200  ;;  %v935_v37 = vadd.f32 %v2926_v15, %v934_v38  ;;  %vm937_vm15 = vweird.f32 %v2926_v15  ;;  %v943_v57 = vor.u32 1.1754944e-38, %v942_v4 }
 0x2e5   : > { %v957_v28 = vand.u32 2147483648, %v2856_v0  ;;  %v3073_v30 = vor.u32 1.1754944e-38, %v1212_v63  ;;  %vm951_vm14 = vweird.f32 %v2856_v0  ;;  %v955_v20 = vand.u32 2147483647, %v2856_v0  ;;  %vm3095_vm2 = vmor %vm936_vm13, %vm937_vm15 }
 0x2e6   : > { %v3080_v2 = vmul.f32 %v2653_v26, %v1184_v1  ;;  %v3082_v51 = vpop.eup %2202  ;;  %vm1207_vm0 = vweird.f32 %v2962_v35  ;;  %v1218_v45 = vsub.f32 1.0, %v1217_v46  ;;  %vm3085_vm1 = vmor %vm951_vm14, %vm952_vm12  ;;  %v977_v3 = vmul.f32 %v3060_v36, %v2979_v55 }
 0x2e7   : > { %v1199_v0 = vsel %vm3002_vm5, %v1198_v23, %v1194_v42  ;;  %v3100_v4 = vadd.f32 %v2962_v35, %v1204_v62  ;;  %v1227_v49 = vand.u32 2147483648, %v2905_v24  ;;  %v954_v17 = vsel %vm3085_vm1, %v2912_v29, %v950_v16  ;;  %vm3136_vm13 = vmor %vm1206_vm6, %vm1207_vm0 }
 0x2e8   : > { %v962_v54 = vmul.f32 %v3068_v52, %v2944_v22  ;;  %v939_v43 = vsel %vm3095_vm2, %v2926_v15, %v935_v37  ;;  %vm1221_vm10 = vweird.f32 %v2905_v24  ;;  %v1225_v23 = vand.u32 2147483647, %v2905_v24  ;;  %v3113_v38 = vpop.xlane.xlu0 %827 }
 0x2e9   : > { %v958_v50 = vor.u32 1.1754944e-38, %v957_v28  ;;  %v3115_v11 = vpop.xlane.xlu2 %881  ;;  %vm956_vm5 = vcmp.eq.f32.partialorder %v955_v20, 8.507059e+37  ;;  %v1232_v29 = vmul.f32 %v3082_v51, %v2946_v6  ;;  %v3120_v53 = vmul.f32 %v2661_v41, %v1199_v0 }
 0x2ea   : > { %v4121_v15 = vsel %vm2883_vm9, %v2816_v9, %v2864_v19  ;;  %v1219_v41 = vmul.f32 %v3018_v60, %v1218_v45  ;;  %v978_v46 = vsub.f32 1.0, %v977_v3  ;;  %2204 = vrcp.f32 %v3010_v47  ;;  %v3174_v45 = vpop.xlane.xlu1 %830 }
 0x2eb   : > { %4120 = vst [vmem:[#allocation24_spill] sm:$0xff] %v3120_v53  ;;  %v3130_v63 = vsel %vm3025_vm11, %v2871_v31, %v4121_v15  ;;  %v959_v34 = vsel %vm956_vm5, %v958_v50, %v954_v17  ;;  %v3146_v9 = vor.u32 1.1754944e-38, %v1227_v49  ;;  %v963_v19 = vsub.f32 1.0, %v962_v54 }
 0x2ec   : > { %v944_v25 = vsel %vm3050_vm8, %v943_v57, %v939_v43  ;;  %v972_v1 = vand.u32 2147483648, %v2944_v22  ;;  %2206 = vrcp.f32 %v3031_v12  ;;  %v1513_v42 = vsel %vm612_vm4, %v2996_v33, 0.0 }
 0x2ed   : > { %v3155_v62 = vmul.f32 %v2696_v32, %v959_v34  ;;  %vm1222_vm9 = vweird.f32 %v3018_v60  ;;  %v970_v16 = vand.u32 2147483647, %v2944_v22  ;;  %v1233_v37 = vsub.f32 1.0, %v1232_v29 }
 0x2ee   : > { %2208 = vrcp.f32 %v3113_v38  ;;  %v3161_v48 = vadd.f32 %v3018_v60, %v1219_v41  ;;  %v979_v57 = vmul.f32 %v3060_v36, %v978_v46  ;;  %v3166_v28 = vmul.f32 %v2674_v5, %v944_v25  ;;  %vm3191_vm6 = vmor %vm1221_vm10, %vm1222_vm9 }
 0x2ef   : > { %2210 = vrcp.f32 %v3077_v14  ;;  %v964_v32 = vmul.f32 %v3068_v52, %v963_v19  ;;  %vm966_vm11 = vweird.f32 %v2944_v22  ;;  %v1242_v33 = vand.u32 2147483648, %v2946_v6 }
 0x2f0   : > { %v3172_v20 = vadd.f32 %v1513_v42, %v3040_v27  ;;  %v3176_v58 = vpop.eup %2204  ;;  %v3178_v3 = vor.u32 1.1754944e-38, %v972_v1  ;;  %v985_v0 = vand.u32 2147483647, %v2979_v55  ;;  %v1390_v5 = vpack.c.bf16 %v3155_v62, %v3166_v28 }
 0x2f1   : > { %v1398_v26 = vpack.c.bf16 %v3120_v53, %v3080_v2  ;;  %v3185_v49 = vpop.xlane.xlu0 %884  ;;  %v1234_v17 = vmul.f32 %v3082_v51, %v1233_v37  ;;  %vm1236_vm7 = vweird.f32 %v2946_v6  ;;  %v987_v54 = vand.u32 2147483648, %v2979_v55 }
 0x2f2   : > { %2212 = vrcp.f32 %v3115_v11  ;;  %v3199_v43 = vpop.eup %2206  ;;  %v1224_v50 = vsel %vm3191_vm6, %v3018_v60, %v3161_v48  ;;  %vm3205_vm8 = vcmp.eq.f32.partialorder %v970_v16, 8.507059e+37  ;;  %v980_v15 = vadd.f32 %v3060_v36, %v979_v57  ;;  %v3212_v41 = vpop.xlane.xlu2 %833 }
 0x2f3   : > { %vm982_vm12 = vweird.f32 %v3060_v36  ;;  %2094 = vxpose.binary.xlu1.c.b16.cont [2/16] (narrow) %v1398_v26, %v1390_v5, 64  ;;  %vm3218_vm15 = vcmp.eq.f32.partialorder %v1210_v7, 8.507059e+37  ;;  %vm3222_vm14 = vcmp.eq.f32.partialorder %v1225_v23, 8.507059e+37  ;;  %v965_v19 = vadd.f32 %v3068_v52, %v964_v32 }
 0x2f4   : > { %v3214_v46 = vpop.eup %2208  ;;  %vm967_vm0 = vweird.f32 %v3068_v52  ;;  %v3228_v25 = vor.u32 1.1754944e-38, %v1242_v33  ;;  %v1247_v1 = vmul.f32 %v3176_v58, %v3010_v47  ;;  %vm981_vm1 = vweird.f32 %v2979_v55 }
 0x2f5   : > { %v3232_v42 = vpop.eup %2210  ;;  %vm3235_vm2 = vcmp.eq.f32.partialorder %v985_v0, 8.507059e+37  ;;  %v1002_v7 = vand.u32 2147483648, %v3031_v12  ;;  %v1257_v23 = vand.u32 2147483648, %v3010_v47  ;;  %v3242_v16 = vadd.f32 %v3082_v51, %v1234_v17  ;;  %vm3247_vm5 = vmor %vm981_vm1, %vm982_vm12 }
 0x2f6   : > { %vm1237_vm10 = vweird.f32 %v3082_v51  ;;  %v988_v55 = vor.u32 1.1754944e-38, %v987_v54  ;;  %vm3254_vm9 = vmor %vm966_vm11, %vm967_vm0  ;;  %v984_v32 = vsel %vm3247_vm5, %v3060_v36, %v980_v15  ;;  %v992_v33 = vmul.f32 %v3199_v43, %v3031_v12 }
 0x2f7   : > { %v1272_v0 = vand.u32 2147483648, %v3077_v14  ;;  %v1007_v5 = vmul.f32 %v3214_v46, %v3113_v38  ;;  %v969_v22 = vsel %vm3254_vm9, %v3068_v52, %v965_v19  ;;  %v1248_v27 = vsub.f32 1.0, %v1247_v1  ;;  %vm3280_vm11 = vmor %vm1236_vm7, %vm1237_vm10 }
 0x2f8   : > { %v3266_v26 = vpop.eup %2212  ;;  %v1255_v17 = vand.u32 2147483647, %v3010_v47  ;;  %v1262_v36 = vmul.f32 %v3232_v42, %v3077_v14  ;;  %v3284_v37 = vor.u32 1.1754944e-38, %v1002_v7  ;;  %vm1252_vm6 = vweird.f32 %v3176_v58 }
 0x2f9   : > { %v3274_v54 = vpop.xlane.xlu1 %887  ;;  %v3287_v52 = vor.u32 1.1754944e-38, %v1257_v23  ;;  %2214 = vrcp.f32 %v3174_v45  ;;  %vm997_vm12 = vweird.f32 %v3199_v43  ;;  %v989_v57 = vsel %vm3235_vm2, %v988_v55, %v984_v32 }
 0x2fa   : > { %v993_v7 = vsub.f32 1.0, %v992_v33  ;;  %vm1251_vm7 = vweird.f32 %v3010_v47  ;;  %v3299_v48 = vor.u32 1.1754944e-38, %v1272_v0  ;;  %v1008_v23 = vsub.f32 1.0, %v1007_v5  ;;  %v3303_v31 = vpop.xlane.xlu0 %836 }
 0x2fb   : > { %v1277_v29 = vmul.f32 %v3266_v26, %v3115_v11  ;;  %vm996_vm0 = vweird.f32 %v3031_v12  ;;  %v1249_v1 = vmul.f32 %v3176_v58, %v1248_v27  ;;  %v1263_v19 = vsub.f32 1.0, %v1262_v36  ;;  %vm3399_vm3 = vmor %vm1251_vm7, %vm1252_vm6 }
 0x2fc   : > { %2216 = vrcp.f32 %v3212_v41  ;;  %v974_v44 = vsel %vm3205_vm8, %v3178_v3, %v969_v22  ;;  %vm1011_vm1 = vweird.f32 %v3113_v38  ;;  %v1015_v55 = vand.u32 2147483647, %v3113_v38 }
 0x2fd   : > { %v3316_v32 = vmul.f32 %v2710_v59, %v989_v57  ;;  %v4140_v33 = vsel %vm3136_vm13, %v2962_v35, %v3100_v4  ;;  %v1229_v3 = vsel %vm3222_vm14, %v3146_v9, %v1224_v50  ;;  %vm1266_vm8 = vweird.f32 %v3077_v14 }
 0x2fe   : > { %v1214_v0 = vsel %vm3218_vm15, %v3073_v30, %v4140_v33  ;;  %v1017_v24 = vand.u32 2147483648, %v3113_v38  ;;  %2218 = vrcp.f32 %v3303_v31  ;;  %v3334_v18 = vmul.f32 %v2686_v39, %v1229_v3  ;;  %vm3415_vm15 = vmor %vm996_vm0, %vm997_vm12 }
 0x2ff   : > { %v3336_v35 = vpop.eup %2214  ;;  %v1009_v4 = vmul.f32 %v3214_v46, %v1008_v23  ;;  %v1278_v30 = vsub.f32 1.0, %v1277_v29  ;;  %v3340_v34 = vmul.f32 %v2698_v40, %v974_v44  ;;  %v3343_v9 = vmul.f32 %v2672_v61, %v1214_v0 }
 0x300   : > { %4141 = vst [vmem:[#allocation25_spill] sm:$0xff] %v3334_v18  ;;  %v994_v50 = vmul.f32 %v3199_v43, %v993_v7  ;;  %v3347_v60 = vadd.f32 %v3176_v58, %v1249_v1  ;;  %v1264_v5 = vmul.f32 %v3232_v42, %v1263_v19  ;;  %v1287_v39 = vand.u32 2147483648, %v3115_v11 }
 0x301   : > { %v3305_v53 = vpop.xlane.xlu2 %890  ;;  %vm3351_vm13 = vcmp.eq.f32.partialorder %v1015_v55, 8.507059e+37  ;;  %2220 = vrcp.f32 %v3185_v49  ;;  %v1391_v61 = vpack.c.bf16 %v3316_v32, %v3340_v34  ;;  %v1399_v40 = vpack.c.bf16 %v3334_v18, %v3343_v9 }
 0x302   : > { %v3361_v29 = vpop.eup %2216  ;;  %vm1267_vm14 = vweird.f32 %v3232_v42  ;;  %vm1012_vm2 = vweird.f32 %v3214_v46  ;;  %v1018_v27 = vor.u32 1.1754944e-38, %v1017_v24  ;;  %v1022_v36 = vmul.f32 %v3336_v35, %v3174_v45  ;;  %v3367_v19 = vpop.xlane.xlu1 %839 }
 0x303   : > { %v4144_v1 = vand.u32 2147483647, %v2946_v6  ;;  %v4147_v7 = vand.u32 2147483647, %v3031_v12  ;;  %vm3381_vm9 = vcmp.eq.f32.partialorder %v1255_v17, 8.507059e+37  ;;  %v1010_v55 = vadd.f32 %v3214_v46, %v1009_v4  ;;  %2095 = vxpose.binary.xlu1.c.b16.cont [3/16] (narrow) %v1399_v40, %v1391_v61, 64  ;;  %vm3431_vm12 = vmor %vm1011_vm1, %vm1012_vm2 }
 0x304   : > { %v1279_v33 = vmul.f32 %v3266_v26, %v1278_v30  ;;  %v1515_v6 = vsel %vm612_vm4, %v3166_v28, 0.0  ;;  %2222 = vrcp.f32 %v3274_v54  ;;  %v3392_v3 = vpop.eup %2218  ;;  %v995_v24 = vadd.f32 %v3199_v43, %v994_v50 }
 0x305   : > { %vm3371_vm10 = vcmp.eq.f32.partialorder %v4144_v1, 8.507059e+37  ;;  %vm3377_vm5 = vcmp.eq.f32.partialorder %v4147_v7, 8.507059e+37  ;;  %v3404_v4 = vadd.f32 %v3232_v42, %v1264_v5  ;;  %v3406_v28 = vor.u32 1.1754944e-38, %v1287_v39 }
 0x306   : > { %v1032_v30 = vand.u32 2147483648, %v3174_v45  ;;  %v1254_v47 = vsel %vm3399_vm3, %v3176_v58, %v3347_v60  ;;  %vm1282_vm6 = vweird.f32 %v3266_v26  ;;  %v1037_v5 = vmul.f32 %v3361_v29, %v3212_v41  ;;  %vm3445_vm3 = vmor %vm1266_vm8, %vm1267_vm14 }
 0x307   : > { %2224 = vrcp.f32 %v3367_v19  ;;  %v1023_v39 = vsub.f32 1.0, %v1022_v36  ;;  %v1516_v40 = vadd.f32 %v1515_v6, %v3172_v20  ;;  %v1517_v58 = vsel %vm612_vm4, %v3155_v62, 0.0  ;;  %v3439_v1 = vpop.eup %2220 }
 0x308   : > { %v1047_v60 = vand.u32 2147483648, %v3212_v41  ;;  %v1014_v36 = vsel %vm3431_vm12, %v3214_v46, %v1010_v55  ;;  %v3453_v20 = vadd.f32 %v3266_v26, %v1279_v33  ;;  %v1052_v62 = vmul.f32 %v3392_v3, %v3303_v31 }
 0x309   : > { %v3390_v0 = vpop.xlane.xlu0 %893  ;;  %v999_v7 = vsel %vm3415_vm15, %v3199_v43, %v995_v24  ;;  %v1030_v17 = vand.u32 2147483647, %v3174_v45  ;;  %v3466_v46 = vor.u32 1.1754944e-38, %v1032_v30  ;;  %vm1026_vm7 = vweird.f32 %v3174_v45  ;;  %v4196_v43 = vld [vmem:[#allocation9_spill] sm:$0xff] }
 0x30a   : > { %v3409_v61 = vpop.xlane.xlu2 %842  ;;  %v3468_v55 = vpop.eup %2222  ;;  %vm1027_vm0 = vweird.f32 %v3336_v35  ;;  %v1518_v33 = vadd.f32 %v1517_v58, %v1516_v40  ;;  %v1038_v12 = vsub.f32 1.0, %v1037_v5  ;;  %v1045_v50 = vand.u32 2147483647, %v3212_v41 }
 0x30b   : > { %2226 = vrcp.f32 %v3409_v61  ;;  %vm4160_vm1 = vweird.f32 %v3115_v11  ;;  %v3481_v24 = vor.u32 1.1754944e-38, %v1047_v60  ;;  %v1292_v30 = vmul.f32 %v3439_v1, %v3185_v49  ;;  %vm3551_vm14 = vmor %vm1026_vm7, %vm1027_vm0 }
 0x30c   : > { %vm3477_vm8 = vmor %vm4160_vm1, %vm1282_vm6  ;;  %v1019_v5 = vsel %vm3351_vm13, %v1018_v27, %v1014_v36  ;;  %v1024_v59 = vmul.f32 %v3336_v35, %v1023_v39  ;;  %v1302_v60 = vand.u32 2147483648, %v3185_v49  ;;  %v1053_v18 = vsub.f32 1.0, %v1052_v62 }
 0x30d   : > { %v3488_v40 = vpop.eup %2224  ;;  %vm1041_vm15 = vweird.f32 %v3212_v41  ;;  %v1307_v6 = vmul.f32 %v3468_v55, %v3274_v54  ;;  %v1004_v22 = vsel %vm3377_vm5, %v3284_v37, %v999_v7  ;;  %v4163_v27 = vsel %vm3280_vm11, %v3082_v51, %v3242_v16  ;;  %v4164_v7 = vld [vmem:[#allocation8_spill] sm:$0xff]  ;;  %v4187_v41 = vld [vmem:[#allocation11_spill] sm:$0xff] }
 0x30e   : > { %v1244_v39 = vsel %vm3371_vm10, %v3228_v25, %v4163_v27  ;;  %v1259_v36 = vsel %vm3381_vm9, %v3287_v52, %v1254_v47  ;;  %v1039_v23 = vmul.f32 %v3361_v29, %v1038_v12  ;;  %vm1056_vm13 = vweird.f32 %v3303_v31 }
 0x30f   : > { %v1060_v15 = vand.u32 2147483647, %v3303_v31  ;;  %v3521_v51 = vmul.f32 %v2730_v56, %v1019_v5  ;;  %v1293_v16 = vsub.f32 1.0, %v1292_v30  ;;  %v1062_v25 = vand.u32 2147483648, %v3303_v31 }
 0x310   : > { %v1067_v37 = vmul.f32 %v3488_v40, %v3367_v19  ;;  %v3527_v52 = vmul.f32 %v2720_v8, %v1259_v36  ;;  %v3530_v57 = vadd.f32 %v3336_v35, %v1024_v59  ;;  %v1054_v44 = vmul.f32 %v3392_v3, %v1053_v18 }
 0x311   : > { %v3515_v58 = vpop.eup %2226  ;;  %v1005_v47 = vmul.f32 %v2716_v10, %v1004_v22  ;;  %v3535_v12 = vmul.f32 %v4164_v7, %v1244_v39  ;;  %vm1042_vm11 = vweird.f32 %v3361_v29  ;;  %v3538_v56 = vor.u32 1.1754944e-38, %v1302_v60 }
 0x312   : > { %v3513_v62 = vpop.xlane.xlu0 %845  ;;  %v1308_v30 = vsub.f32 1.0, %v1307_v6  ;;  %v1082_v5 = vmul.f32 %v3515_v58, %v3409_v61  ;;  %v1040_v8 = vadd.f32 %v3361_v29, %v1039_v23  ;;  %v1317_v59 = vand.u32 2147483648, %v3274_v54  ;;  %vm3599_vm12 = vmor %vm1041_vm15, %vm1042_vm11 }
 0x313   : > { %v1392_v27 = vpack.c.bf16 %v3521_v51, %v1005_v47  ;;  %v1400_v10 = vpack.c.bf16 %v3527_v52, %v3535_v12  ;;  %vm3555_vm2 = vcmp.eq.f32.partialorder %v1030_v17, 8.507059e+37  ;;  %vm3559_vm10 = vcmp.eq.f32.partialorder %v1045_v50, 8.507059e+37 }
 0x314   : > { %v1294_v22 = vmul.f32 %v3439_v1, %v1293_v16  ;;  %v1519_v39 = vsel %vm612_vm4, %v3340_v34, 0.0  ;;  %v1068_v36 = vsub.f32 1.0, %v1067_v37  ;;  %2228 = vrcp.f32 %v3513_v62 }
 0x315   : > { %v4171_v45 = vand.u32 2147483647, %v3077_v14  ;;  %v1029_v17 = vsel %vm3551_vm14, %v3336_v35, %v3530_v57  ;;  %v3578_v50 = vadd.f32 %v3392_v3, %v1054_v44  ;;  %vm1057_vm9 = vweird.f32 %v3392_v3  ;;  %2096 = vxpose.binary.xlu1.c.b16.cont [4/16] (narrow) %v1400_v10, %v1392_v27, 64 }
 0x316   : > { %v3581_v34 = vor.u32 1.1754944e-38, %v1062_v25  ;;  %v4174_v16 = vand.u32 2147483647, %v3115_v11  ;;  %v1309_v37 = vmul.f32 %v3468_v55, %v1308_v30  ;;  %v1315_v7 = vand.u32 2147483647, %v3274_v54  ;;  %vm3617_vm7 = vmor %vm1056_vm13, %vm1057_vm9 }
 0x317   : > { %vm3569_vm5 = vcmp.eq.f32.partialorder %v4171_v45, 8.507059e+37  ;;  %v1521_v35 = vsel %vm612_vm4, %v3316_v32, 0.0  ;;  %v1083_v57 = vsub.f32 1.0, %v1082_v5  ;;  %v3603_v25 = vor.u32 1.1754944e-38, %v1317_v59 }
 0x318   : > { %vm3585_vm6 = vcmp.eq.f32.partialorder %v4174_v16, 8.507059e+37  ;;  %v1520_v27 = vadd.f32 %v1519_v39, %v1518_v33  ;;  %v1075_v30 = vand.u32 2147483647, %v3367_v19  ;;  %v1077_v10 = vand.u32 2147483648, %v3367_v19 }
 0x319   : > { %v1044_v32 = vsel %vm3599_vm12, %v3361_v29, %v1040_v8  ;;  %v3611_v5 = vadd.f32 %v3439_v1, %v1294_v22  ;;  %2230 = vrcp.f32 %v3305_v53  ;;  %v1069_v33 = vmul.f32 %v3488_v40, %v1068_v36 }
 0x31a   : > { %v3593_v44 = vpop.xlane.xlu0 %851  ;;  %v1059_v29 = vsel %vm3617_vm7, %v3392_v3, %v3578_v50  ;;  %v1522_v8 = vadd.f32 %v1521_v35, %v1520_v27  ;;  %v1090_v59 = vand.u32 2147483647, %v3409_v61  ;;  %v3629_v18 = vpop.eup %2228  ;;  %v3632_v31 = vadd.f32 %v3468_v55, %v1309_v37  ;;  %v4206_v3 = vld [vmem:[#allocation17_spill] sm:$0xff] }
 0x31b   : > { %2232 = vrcp.f32 %v3593_v44  ;;  %vm1312_vm0 = vweird.f32 %v3468_v55  ;;  %vm1071_vm1 = vweird.f32 %v3367_v19  ;;  %v1084_v22 = vmul.f32 %v3515_v58, %v1083_v57 }
 0x31c   : > { %vm1086_vm15 = vweird.f32 %v3409_v61  ;;  %vm3638_vm13 = vcmp.eq.f32.partialorder %v1060_v15, 8.507059e+37  ;;  %vm3642_vm11 = vcmp.eq.f32.partialorder %v1075_v30, 8.507059e+37  ;;  %v1078_v36 = vor.u32 1.1754944e-38, %v1077_v10 }
 0x31d   : > { %v1092_v45 = vand.u32 2147483648, %v3409_v61  ;;  %v1523_v50 = vsel %vm612_vm4, %v1005_v47, 0.0  ;;  %v1097_v16 = vmul.f32 %v3629_v18, %v3513_v62  ;;  %v1070_v37 = vadd.f32 %v3488_v40, %v1069_v33 }
 0x31e   : > { %vm1072_vm9 = vweird.f32 %v3488_v40  ;;  %vm1087_vm12 = vweird.f32 %v3515_v58  ;;  %2234 = vrcp.f32 %v3390_v0  ;;  %vm3655_vm7 = vcmp.eq.f32.partialorder %v1090_v59, 8.507059e+37 }
 0x31f   : > { %v1525_v47 = vsel %vm612_vm4, %v3521_v51, 0.0  ;;  %v1098_v35 = vsub.f32 1.0, %v1097_v16  ;;  %v1034_v57 = vsel %vm3555_vm2, %v3466_v46, %v1029_v17  ;;  %v1049_v11 = vsel %vm3559_vm10, %v3481_v24, %v1044_v32  ;;  %v3667_v27 = vpop.eup %2230  ;;  %vm3686_vm2 = vmor %vm1071_vm1, %vm1072_vm9  ;;  %v4191_v17 = vld [vmem:[#allocation13_spill] sm:$0xff] }
 0x320   : > { %vm1297_vm14 = vweird.f32 %v3439_v1  ;;  %v1085_v30 = vadd.f32 %v3515_v58, %v1084_v22  ;;  %v1524_v10 = vadd.f32 %v1523_v50, %v1522_v8  ;;  %v1035_v33 = vmul.f32 %v4187_v41, %v1034_v57  ;;  %v4193_v8 = vld [vmem:[#allocation10_spill] sm:$0xff] }
 0x321   : > { %v4188_v51 = vsel %vm3445_vm3, %v3232_v42, %v3404_v4  ;;  %v3680_v6 = vpop.eup %2232  ;;  %v1093_v60 = vor.u32 1.1754944e-38, %v1092_v45  ;;  %v1099_v38 = vmul.f32 %v3629_v18, %v1098_v35  ;;  %v1050_v32 = vmul.f32 %v4191_v17, %v1049_v11  ;;  %v4213_v17 = vld [vmem:[#allocation19_spill] sm:$0xff] }
 0x322   : > { %v1274_v46 = vsel %vm3569_vm5, %v3299_v48, %v4188_v51  ;;  %v4192_v42 = vsel %vm3477_vm8, %v3266_v26, %v3453_v20  ;;  %vm1296_vm3 = vweird.f32 %v3185_v49  ;;  %v1074_v19 = vsel %vm3686_vm2, %v3488_v40, %v1070_v37  ;;  %vm3713_vm8 = vmor %vm1086_vm15, %vm1087_vm12 }
 0x323   : > { %v1289_v48 = vsel %vm3585_vm6, %v3406_v28, %v4192_v42  ;;  %v1526_v4 = vadd.f32 %v1525_v47, %v1524_v10  ;;  %v1127_v23 = vmul.f32 %v3680_v6, %v3593_v44  ;;  %vm1101_vm10 = vweird.f32 %v3513_v62 }
 0x324   : > { %v3707_v59 = vmul.f32 %v4193_v8, %v1289_v48  ;;  %v1105_v28 = vand.u32 2147483647, %v3513_v62  ;;  %v1107_v20 = vand.u32 2147483648, %v3513_v62  ;;  %v3721_v40 = vmul.f32 %v4196_v43, %v1274_v46  ;;  %v3723_v14 = vpop.eup %2234 }
 0x325   : > { %vm3725_vm5 = vcmp.eq.f32.partialorder %v1315_v7, 8.507059e+37  ;;  %v1089_v61 = vsel %vm3713_vm8, %v3515_v58, %v1085_v30  ;;  %vm1102_vm6 = vweird.f32 %v3629_v18  ;;  %v1128_v45 = vsub.f32 1.0, %v1127_v23  ;;  %v3822_v23 = vpop.xlane.xlu1 %896  ;;  %v4226_v30 = vld [vmem:[#allocation12_spill] sm:$0xff] }
 0x326   : > { %v1527_v50 = vsel %vm612_vm4, %v1035_v33, 0.0  ;;  %v1100_v16 = vadd.f32 %v3629_v18, %v1099_v38  ;;  %vm1132_vm1 = vweird.f32 %v3680_v6  ;;  %v1393_v37 = vpack.c.bf16 %v1050_v32, %v1035_v33 }
 0x327   : > { %v1401_v7 = vpack.c.bf16 %v3707_v59, %v3721_v40  ;;  %v1129_v47 = vmul.f32 %v3680_v6, %v1128_v45  ;;  %v1529_v35 = vsel %vm612_vm4, %v1050_v32, 0.0  ;;  %v1064_v58 = vsel %vm3638_vm13, %v3581_v34, %v1059_v29  ;;  %v4205_v34 = vld [vmem:[#allocation15_spill] sm:$0xff] }
 0x328   : > { %v1079_v57 = vsel %vm3642_vm11, %v1078_v36, %v1074_v19  ;;  %v4199_v11 = vand.u32 2147483647, %v3185_v49  ;;  %vm4202_vm9 = vweird.f32 %v3274_v54  ;;  %v1528_v41 = vadd.f32 %v1527_v50, %v1526_v4 }
 0x329   : > { %vm3755_vm12 = vmor %vm4202_vm9, %vm1312_vm0  ;;  %2097 = vxpose.binary.xlu1.c.b16.cont [5/16] (narrow) %v1401_v7, %v1393_v37, 64  ;;  %v3760_v29 = vmul.f32 %v4205_v34, %v1064_v58  ;;  %v3763_v39 = vmul.f32 %v4206_v3, %v1079_v57  ;;  %v1130_v33 = vadd.f32 %v3680_v6, %v1129_v47  ;;  %v1137_v51 = vand.u32 2147483648, %v3593_v44  ;;  %v4223_v7 = vld [vmem:[#allocation22_spill] sm:$0xff] }
 0x32a   : > { %vm3747_vm15 = vcmp.eq.f32.partialorder %v4199_v11, 8.507059e+37  ;;  %v1314_v36 = vsel %vm3755_vm12, %v3468_v55, %v3632_v31  ;;  %vm3773_vm0 = vmor %vm1101_vm10, %vm1102_vm6  ;;  %v1094_v46 = vsel %vm3655_vm7, %v1093_v60, %v1089_v61  ;;  %v2280_v24 = vmov 0.0   ;;  %v4221_v61 = vld [vmem:[#allocation7_spill] sm:$0xff] }
 0x32b   : > { %vm4209_vm13 = vcmask 261120   ;;  %v1104_v55 = vsel %vm3773_vm0, %v3629_v18, %v1100_v16  ;;  %vm1131_vm11 = vweird.f32 %v3593_v44  ;;  %v1135_v62 = vand.u32 2147483647, %v3593_v44  ;;  %vm3806_vm10 = vmor %vm1296_vm3, %vm1297_vm14 }
 0x32c   : > { %332 = vst.msk [vmem:[#allocation5] sm:$0xff] %vm4209_vm13, %v2280_v24  ;;  %v1530_v31 = vadd.f32 %v1529_v35, %v1528_v41  ;;  %vm4210_vm2 = vmmov %vm4209_vm13  ;;  %v1108_v38 = vor.u32 1.1754944e-38, %v1107_v20  ;;  %v1531_v60 = vsel %vm612_vm4, %v3760_v29, 0.0  ;;  %v1533_v18 = vsel %vm612_vm4, %v3763_v39, 0.0  ;;  %v4219_v20 = vld [vmem:[#allocation21_spill] sm:$0xff]  ;;  %v4225_v35 = vld [vmem:[#allocation14_spill] sm:$0xff] }
 0x32d   : > { %333 = vst.msk [vmem:[#allocation5 + $0x8] sm:$0xff] %vm4210_vm2, %v2280_v24  ;;  %vm3790_vm8 = vmor %vm1131_vm11, %vm1132_vm1  ;;  %v3799_v32 = vmul.f32 %v4213_v17, %v1094_v46  ;;  %v1337_v42 = vmul.f32 %v3723_v14, %v3390_v0  ;;  %vm1106_vm6 = vcmp.eq.f32.partialorder %v1105_v28, 8.507059e+37  ;;  %v1299_v49 = vsel %vm3806_vm10, %v3439_v1, %v3611_v5  ;;  %v3832_v1 = vpop.xlane.xlu2 %899 }
 0x32e   : > { %vm4214_vm7 = vmmov %vm4210_vm2  ;;  %v1134_v48 = vsel %vm3790_vm8, %v3680_v6, %v1130_v33  ;;  %v1532_v19 = vadd.f32 %v1531_v60, %v1530_v31  ;;  %v1322_v4 = vmul.f32 %v3667_v27, %v3305_v53  ;;  %v1138_v8 = vor.u32 1.1754944e-38, %v1137_v51 }
 0x32f   : > { %334 = vst.msk [vmem:[#allocation5 + $0x10] sm:$0xff] %vm4214_vm7, %v2280_v24  ;;  %vm4217_vm1 = vmmov %vm4210_vm2  ;;  %v1109_v26 = vsel %vm1106_vm6, %v1108_v38, %v1104_v55  ;;  %vm1136_vm3 = vcmp.eq.f32.partialorder %v1135_v62, 8.507059e+37  ;;  %v1319_v6 = vsel %vm3725_vm5, %v3603_v25, %v1314_v36  ;;  %v1535_v5 = vsel %vm612_vm4, %v3799_v32, 0.0 }
 0x330   : > { %335 = vst.msk [vmem:[#allocation5 + $0x18] sm:$0xff] %vm4217_vm1, %v2280_v24  ;;  %vm4218_vm14 = vmmov %vm4217_vm1  ;;  %v1534_v28 = vadd.f32 %v1533_v18, %v1532_v19  ;;  %v3829_v43 = vmul.f32 %v4219_v20, %v1109_v26  ;;  %vm340_vm12 = vcmask 516096   ;;  %v3838_v45 = vmul.f32 %v4221_v61, %v3130_v63 }
 0x331   : > { %336 = vst.msk [vmem:[#allocation5 + $0x20] sm:$0xff] %vm4218_vm14, %v2280_v24  ;;  %vm4220_vm9 = vmmov %vm4217_vm1  ;;  %v1139_v50 = vsel %vm1136_vm3, %v1138_v8, %v1134_v48  ;;  %v1338_v25 = vsub.f32 1.0, %v1337_v42  ;;  %2236 = vrcp.f32 %v3822_v23  ;;  %v1304_v37 = vsel %vm3747_vm15, %v3538_v56, %v1299_v49  ;;  %v4229_v48 = vld [vmem:[#allocation24_spill] sm:$0xff] }
 0x332   : > { %337 = vst.msk [vmem:[#allocation5 + $0x28] sm:$0xff] %vm4220_vm9, %v2280_v24  ;;  %vm4222_vm0 = vmmov %vm4217_vm1  ;;  %v1536_v22 = vadd.f32 %v1535_v5, %v1534_v28  ;;  %v1537_v16 = vsel %vm612_vm4, %v3829_v43, 0.0  ;;  %v3849_v47 = vmul.f32 %v4223_v7, %v1139_v50  ;;  %v1323_v63 = vsub.f32 1.0, %v1322_v4 }
 0x333   : > { %338 = vst.msk [vmem:[#allocation5 + $0x30] sm:$0xff] %vm4222_vm0, %v2280_v24  ;;  %vm4224_vm5 = vmmov %vm4222_vm0  ;;  %2238 = vrcp.f32 %v3832_v1  ;;  %v3854_v58 = vmul.f32 %v4225_v35, %v1319_v6  ;;  %v1539_v11 = vsel %vm612_vm4, %v3838_v45, 0.0  ;;  %v1339_v56 = vmul.f32 %v3723_v14, %v1338_v25  ;;  %v4231_v25 = vld [vmem:[#allocation18_spill] sm:$0xff] }
 0x334   : > { %341 = vst.msk [vmem:[#allocation6] sm:$0x1] %vm340_vm12, %v2280_v24  ;;  %v1538_v57 = vadd.f32 %v1537_v16, %v1536_v22  ;;  %v1541_v10 = vsel %vm612_vm4, %v3849_v47, 0.0  ;;  %v3862_v41 = vmul.f32 %v4226_v30, %v1304_v37  ;;  %v1324_v36 = vmul.f32 %v3667_v27, %v1323_v63 }
 0x335   : > { %339 = vst.msk [vmem:[#allocation5 + $0x38] sm:$0xff] %vm4224_vm5, %v2280_v24  ;;  %v1394_v54 = vpack.c.bf16 %v3763_v39, %v3760_v29  ;;  %v1543_v46 = vsel %vm612_vm4, %v3013_v13, 0.0  ;;  %v1340_v55 = vadd.f32 %v3723_v14, %v1339_v56  ;;  %vm1342_vm15 = vweird.f32 %v3723_v14 }
 0x336   : > { %v1540_v34 = vadd.f32 %v1539_v11, %v1538_v57  ;;  %v1402_v33 = vpack.c.bf16 %v3854_v58, %v3862_v41  ;;  %v1545_v31 = vsel %vm612_vm4, %v3016_v21, 0.0  ;;  %vm1341_vm13 = vweird.f32 %v3390_v0 }
 0x337   : > { %v3864_v3 = vpop.eup %2236  ;;  %v1347_v29 = vand.u32 2147483648, %v3390_v0  ;;  %v1325_v13 = vadd.f32 %v3667_v27, %v1324_v36  ;;  %vm1327_vm11 = vweird.f32 %v3667_v27  ;;  %v1345_v38 = vand.u32 2147483647, %v3390_v0  ;;  %vm3889_vm2 = vmor %vm1341_vm13, %vm1342_vm15 }
 0x338   : > { %v1542_v51 = vadd.f32 %v1541_v10, %v1540_v34  ;;  %v1352_v39 = vmul.f32 %v3864_v3, %v3822_v23  ;;  %v1547_v60 = vsel %vm612_vm4, %v3080_v2, 0.0  ;;  %v1332_v18 = vand.u32 2147483648, %v3305_v53 }
 0x339   : > { %v3873_v24 = vpop.eup %2238  ;;  %2098 = vxpose.binary.xlu1.c.b16.cont [6/16] (narrow) %v1402_v33, %v1394_v54, 64  ;;  %vm1326_vm8 = vweird.f32 %v3305_v53  ;;  %v1330_v44 = vand.u32 2147483647, %v3305_v53  ;;  %v1344_v0 = vsel %vm3889_vm2, %v3723_v14, %v1340_v55  ;;  %v1549_v2 = vsel %vm612_vm4, %v4229_v48, 0.0  ;;  %v4230_v14 = vld [vmem:[#allocation25_spill] sm:$0xff] }
 0x33a   : > { %v1544_v62 = vadd.f32 %v1543_v46, %v1542_v51  ;;  %v1367_v17 = vmul.f32 %v3873_v24, %v3832_v1  ;;  %vm1328_vm7 = vmor %vm1326_vm8, %vm1327_vm11  ;;  %v1348_v19 = vor.u32 1.1754944e-38, %v1347_v29  ;;  %v1353_v49 = vsub.f32 1.0, %v1352_v39 }
 0x33b   : > { %v1329_v4 = vsel %vm1328_vm7, %v3667_v27, %v1325_v13  ;;  %vm1346_vm10 = vcmp.eq.f32.partialorder %v1345_v38, 8.507059e+37  ;;  %v1551_v26 = vsel %vm612_vm4, %v3343_v9, 0.0  ;;  %v1333_v6 = vor.u32 1.1754944e-38, %v1332_v18  ;;  %v4232_v9 = vld [vmem:[#allocation16_spill] sm:$0xff] }
 0x33c   : > { %v1546_v15 = vadd.f32 %v1545_v31, %v1544_v62  ;;  %v1368_v53 = vsub.f32 1.0, %v1367_v17  ;;  %v1349_v28 = vsel %vm1346_vm10, %v1348_v19, %v1344_v0  ;;  %vm1331_vm6 = vcmp.eq.f32.partialorder %v1330_v44, 8.507059e+37  ;;  %v4235_v13 = vld [vmem:[#allocation20_spill] sm:$0xff] }
 0x33d   : > { %v1553_v5 = vsel %vm612_vm4, %v4230_v14, 0.0  ;;  %v1354_v61 = vmul.f32 %v3864_v3, %v1353_v49  ;;  %v1334_v50 = vsel %vm1331_vm6, %v1333_v6, %v1329_v4  ;;  %v1350_v22 = vmul.f32 %v4231_v25, %v1349_v28 }
 0x33e   : > { %v1548_v42 = vadd.f32 %v1547_v60, %v1546_v15  ;;  %v1555_v27 = vsel %vm612_vm4, %v3535_v12, 0.0  ;;  %v1369_v37 = vmul.f32 %v3873_v24, %v1368_v53  ;;  %v1335_v7 = vmul.f32 %v4232_v9, %v1334_v50 }
 0x33f   : > { %v1557_v35 = vsel %vm612_vm4, %v3527_v52, 0.0  ;;  %v1355_v57 = vadd.f32 %v3864_v3, %v1354_v61  ;;  %vm1356_vm1 = vweird.f32 %v3822_v23  ;;  %vm1357_vm14 = vweird.f32 %v3864_v3 }
 0x340   : > { %v1550_v8 = vadd.f32 %v1549_v2, %v1548_v42  ;;  %v1362_v11 = vand.u32 2147483648, %v3822_v23  ;;  %v1395_v10 = vpack.c.bf16 %v3829_v43, %v3799_v32  ;;  %v1403_v12 = vpack.c.bf16 %v1350_v22, %v1335_v7  ;;  %vm3926_vm9 = vmor %vm1356_vm1, %vm1357_vm14 }
 0x341   : > { %v1360_v30 = vand.u32 2147483647, %v3822_v23  ;;  %v1370_v34 = vadd.f32 %v3873_v24, %v1369_v37  ;;  %vm1372_vm3 = vweird.f32 %v3873_v24  ;;  %v1559_v52 = vsel %vm612_vm4, %v3721_v40, 0.0 }
 0x342   : > { %v1552_v20 = vadd.f32 %v1551_v26, %v1550_v8  ;;  %v1377_v54 = vand.u32 2147483648, %v3832_v1  ;;  %v1359_v32 = vsel %vm3926_vm9, %v3864_v3, %v1355_v57  ;;  %vm1371_vm0 = vweird.f32 %v3832_v1  ;;  %v1511_v8 = vld [vmem:[#allocation6] sm:$0x1] }
 0x343   : > { %v1375_v23 = vand.u32 2147483647, %v3832_v1  ;;  %v1561_v43 = vsel %vm612_vm4, %v3707_v59, 0.0  ;;  %v1363_v40 = vor.u32 1.1754944e-38, %v1362_v11  ;;  %vm1373_vm5 = vmor %vm1371_vm0, %vm1372_vm3  ;;  %vm1361_vm15 = vcmp.eq.f32.partialorder %v1360_v30, 8.507059e+37  ;;  %v1381_v11 = vld [vmem:[#allocation5] sm:$0xff] }
 0x344   : > { %v1554_v16 = vadd.f32 %v1553_v5, %v1552_v20  ;;  %v1374_v46 = vsel %vm1373_vm5, %v3873_v24, %v1370_v34  ;;  %v1563_v55 = vsel %vm612_vm4, %v3862_v41, 0.0  ;;  %v1378_v62 = vor.u32 1.1754944e-38, %v1377_v54  ;;  %v4236_v24 = vld [vmem:[#allocation23_spill] sm:$0xff] }
 0x345   : > { %v1364_v31 = vsel %vm1361_vm15, %v1363_v40, %v1359_v32  ;;  %vm1376_vm13 = vcmp.eq.f32.partialorder %v1375_v23, 8.507059e+37  ;;  %v1565_v3 = vsel %vm612_vm4, %v3854_v58, 0.0  ;;  %v1567_v59 = vsel %vm612_vm4, %v1335_v7, 0.0  ;;  %v1382_v40 = vld [vmem:[#allocation5 + $0x8] sm:$0xff] }
 0x346   : > { %v1556_v63 = vadd.f32 %v1555_v27, %v1554_v16  ;;  %v1379_v1 = vsel %vm1376_vm13, %v1378_v62, %v1374_v46  ;;  %v1365_v38 = vmul.f32 %v4235_v13, %v1364_v31  ;;  %v1569_v60 = vsel %vm612_vm4, %v1350_v22, 0.0  ;;  %v1383_v31 = vld [vmem:[#allocation5 + $0x10] sm:$0xff]  ;;  %v1384_v13 = vld [vmem:[#allocation5 + $0x18] sm:$0xff] }
 0x347   : > { %v1380_v18 = vmul.f32 %v4236_v24, %v1379_v1  ;;  %v1396_v58 = vpack.c.bf16 %v3849_v47, %v3838_v45  ;;  %v2281_v61 = vmov 0  }
 0x348   : > { %v1558_v56 = vadd.f32 %v1557_v35, %v1556_v63  ;;  %v1571_v41 = vsel %vm612_vm4, %v1365_v38, 0.0  ;;  %2109 = vset.pattern.permute.xlu0 %v2281_v61 }
 0x349   : > { %2099 = vxpose.binary.xlu1.c.b16.cont [7/16] (narrow) %v1403_v12, %v1395_v10, 64  ;;  %v1573_v44 = vsel %vm612_vm4, %v1380_v18, 0.0  ;;  %v1404_v0 = vpack.c.bf16 %v1380_v18, %v1365_v38  ;;  %vm4237_vm4 = vcmask 261120   ;;  %v1385_v18 = vld [vmem:[#allocation5 + $0x20] sm:$0xff] }
 0x34a   : > { %v1560_v33 = vadd.f32 %v1559_v52, %v1558_v56  ;;  %vm4238_vm11 = vmmov %vm4237_vm4 }
 0x34b   : > { %vm4239_vm2 = vmmov %vm4237_vm4 }
 0x34c   : > { %v1562_v51 = vadd.f32 %v1561_v43, %v1560_v33  ;;  %vm4240_vm8 = vmmov %vm4239_vm2 }
 0x34d   : > { %vm4241_vm7 = vmmov %vm4239_vm2 }
 0x34e   : > { %v1564_v29 = vadd.f32 %v1563_v55, %v1562_v51  ;;  %vm4242_vm3 = vmmov %vm4239_vm2 }
 0x34f   : > { %vm4243_vm9 = vmmov %vm4239_vm2 }
 0x350   : > { %v1566_v39 = vadd.f32 %v1565_v3, %v1564_v29  ;;  %vm4244_vm0 = vmmov %vm4239_vm2 }
 0x351   : > { %vm4245_vm5 = vmmov %vm4244_vm0 }
 0x352   : > { %v1568_v15 = vadd.f32 %v1567_v59, %v1566_v39 }
 0x354   : > { %v1570_v21 = vadd.f32 %v1569_v60, %v1568_v15 }
 0x356   : > { %v1572_v17 = vadd.f32 %v1571_v41, %v1570_v21 }
 0x358   : > { %v1574_v42 = vadd.f32 %v1573_v44, %v1572_v17 }
 0x359   : > { %2100 = vxpose.binary.xlu1.c.b16.end [8/16] (narrow) %v1404_v0, %v1396_v58, 64 }
 0x35a   : > { %v1575_v48 = vrot.slane %v1574_v42, 4 }
 0x35c   : > { %v1576_v2 = vadd.f32 %v1575_v48, %v1574_v42 }
 0x35e   : > { %v1577_v19 = vrot.slane %v1576_v2, 2 }
 0x360   : > { %v1578_v49 = vadd.f32 %v1577_v19, %v1576_v2 }
 0x362   : > { %v1579_v4 = vrot.slane %v1578_v49, 1 }
 0x364   : > { %v1580_v26 = vadd.f32 %v1579_v4, %v1578_v49 }
 0x366   : > { %v1581_v6 = vadd.f32 %v1580_v26, %v1511_v8  ;;  %v1386_v8 = vld [vmem:[#allocation5 + $0x28] sm:$0xff] }
 0x368   : > { %1583 = vst.msk [vmem:[#allocation6] sm:$0x1] %vm340_vm12, %v1581_v6 }
 0x36f   : > { %v1595_v53 = vld [vmem:[#allocation6] sm:$0x1] }
 0x370   : > { %1596 = vxpose.xlu2.b32.start.end [1/1] (short) (narrow) %v1595_v53, 64 }
 0x395   : > { %v2101_v28 = vpop.trf.xlu1 }
 0x396   : > { %1445 = vmatmul.bf16.vlgmr.msrb.gmra.mxu1 %v2101_v28 }
 0x39d   : > { %v2102_v20 = vpop.trf.xlu1 }
 0x39e   : > { %1474 = vmatmul.bf16.vlgmr.msra.gmra.mxu2 %v2102_v20 }
 0x3a5   : > { %v2103_v45 = vpop.trf.xlu1 }
 0x3a6   : > { %1450 = vmatmul.bf16.gmra.mxu1 %v2103_v45 }
 0x3ad   : > { %v2104_v47 = vpop.trf.xlu1 }
 0x3ae   : > { %1479 = vmatmul.bf16.gmra.mxu2 %v2104_v47 }
 0x3b5   : > { %v2105_v14 = vpop.trf.xlu1 }
 0x3b6   : > { %1455 = vmatmul.bf16.gmra.mxu1 %v2105_v14 }
 0x3bd   : > { %v2106_v5 = vpop.trf.xlu1 }
 0x3be   : > { %1484 = vmatmul.bf16.gmra.mxu2 %v2106_v5 }
 0x3c5   : > { %v2107_v50 = vpop.trf.xlu1 }
 0x3c6   : > { %1460 = vmatmul.bf16.gmra.mxu1 %v2107_v50  ;;  %v1387_v50 = vld [vmem:[#allocation5 + $0x30] sm:$0xff] }
 0x3cd   : > { %v2108_v25 = vpop.trf.xlu1 }
 0x3ce   : > { %1489 = vmatmul.bf16.gmra.mxu2 %v2108_v25 }
 0x3d2   : > { %2110 = vset.pattern.permute.xlu2 %v2281_v61 }
 0x409   : > { %v1612_v22 = vpop.trf.xlu2 }
 0x40a   : > { %v1628_v16 = vadd.f32 1e-08, %v1612_v22 }
 0x40c   : > { %1638 = vperm.xlu0 %2109, %v1628_v16  }
 0x411   : > { %v1613_v27 = vpop.trf.xlu2 }
 0x412   : > { %v1629_v37 = vadd.f32 1e-08, %v1613_v27 }
 0x413   : > { %v1446_v57 = vpop.f32.mrf.mxu1 }
 0x414   : > { %1643 = vperm.xlu2 %2110, %v1629_v37  }
 0x419   : > { %v1614_v9 = vpop.trf.xlu2 }
 0x41a   : > { %v1630_v7 = vadd.f32 1e-08, %v1614_v9 }
 0x41b   : > { %v1448_v43 = vpop.f32.mrf.mxu1 }
 0x41c   : > { %1648 = vperm.xlu0 %2109, %v1630_v7  }
 0x421   : > { %v1615_v63 = vpop.trf.xlu2  ;;  %v1475_v10 = vpop.f32.mrf.mxu2 }
 0x422   : > { %v1631_v35 = vadd.f32 1e-08, %v1615_v63  ;;  %v1476_v12 = vadd.f32 %v1475_v10, %v1446_v57 }
 0x423   : > { %v1451_v62 = vpop.f32.mrf.mxu1 }
 0x424   : > { %1653 = vperm.xlu0 %2109, %v1631_v35   ;;  %v1495_v56 = vadd.f32 %v1476_v12, %v1381_v11 }
 0x426   : > { %1503 = vst.msk [vmem:[#allocation5] sm:$0xff] %vm4237_vm4, %v1495_v56  ;;  %v1388_v56 = vld [vmem:[#allocation5 + $0x38] sm:$0xff] }
 0x429   : > { %v1616_v30 = vpop.trf.xlu2  ;;  %v1477_v51 = vpop.f32.mrf.mxu2 }
 0x42a   : > { %v1632_v34 = vadd.f32 1e-08, %v1616_v30  ;;  %v1478_v46 = vadd.f32 %v1477_v51, %v1448_v43 }
 0x42b   : > { %v1453_v39 = vpop.f32.mrf.mxu1 }
 0x42c   : > { %1658 = vperm.xlu0 %2109, %v1632_v34   ;;  %v1496_v55 = vadd.f32 %v1478_v46, %v1382_v40 }
 0x42e   : > { %1504 = vst.msk [vmem:[#allocation5 + $0x8] sm:$0xff] %vm4238_vm11, %v1496_v55 }
 0x431   : > { %v1617_v52 = vpop.trf.xlu2  ;;  %v1480_v29 = vpop.f32.mrf.mxu2 }
 0x432   : > { %v1633_v36 = vadd.f32 1e-08, %v1617_v52  ;;  %v1481_v3 = vadd.f32 %v1480_v29, %v1451_v62 }
 0x433   : > { %v1456_v24 = vpop.f32.mrf.mxu1 }
 0x434   : > { %1663 = vperm.xlu0 %2109, %v1633_v36   ;;  %v1497_v1 = vadd.f32 %v1481_v3, %v1383_v31 }
 0x435   : > { %v1588_v28 = vld [vmem:[#allocation5 + $0x8] sm:$0xff] }
 0x436   : > { %1505 = vst.msk [vmem:[#allocation5 + $0x10] sm:$0xff] %vm4239_vm2, %v1497_v1  ;;  %vm4246_vm2 = vmmov %vm4244_vm0 }
 0x439   : > { %v1618_v54 = vpop.trf.xlu2  ;;  %v1482_v59 = vpop.f32.mrf.mxu2 }
 0x43a   : > { %v1634_v33 = vadd.f32 1e-08, %v1618_v54  ;;  %v1483_v38 = vadd.f32 %v1482_v59, %v1453_v39  ;;  %v1587_v54 = vld [vmem:[#allocation5] sm:$0xff] }
 0x43b   : > { %v1458_v49 = vpop.f32.mrf.mxu1 }
 0x43c   : > { %1668 = vperm.xlu0 %2109, %v1634_v33   ;;  %v1498_v60 = vadd.f32 %v1483_v38, %v1384_v13 }
 0x43e   : > { %1506 = vst.msk [vmem:[#allocation5 + $0x18] sm:$0xff] %vm4240_vm8, %v1498_v60  ;;  %vm4247_vm8 = vmmov %vm4244_vm0 }
 0x441   : > { %v1619_v32 = vpop.trf.xlu2  ;;  %v1485_v21 = vpop.f32.mrf.mxu2 }
 0x442   : > { %v1635_v23 = vadd.f32 1e-08, %v1619_v32  ;;  %v1486_v17 = vadd.f32 %v1485_v21, %v1456_v24  ;;  %v1589_v24 = vld [vmem:[#allocation5 + $0x10] sm:$0xff] }
 0x443   : > { %v1461_v61 = vpop.f32.mrf.mxu1 }
 0x444   : > { %1673 = vperm.xlu0 %2109, %v1635_v23   ;;  %v1499_v58 = vadd.f32 %v1486_v17, %v1385_v18 }
 0x446   : > { %1507 = vst.msk [vmem:[#allocation5 + $0x20] sm:$0xff] %vm4241_vm7, %v1499_v58  ;;  %vm4248_vm7 = vmmov %vm4244_vm0 }
 0x449   : > { %v1487_v4 = vpop.f32.mrf.mxu2 }
 0x44a   : > { %v1488_v26 = vadd.f32 %v1487_v4, %v1458_v49 }
 0x44b   : > { %v1463_v10 = vpop.f32.mrf.mxu1 }
 0x44c   : > { %v1500_v47 = vadd.f32 %v1488_v26, %v1386_v8  ;;  %v1590_v26 = vld [vmem:[#allocation5 + $0x18] sm:$0xff] }
 0x44e   : > { %1508 = vst.msk [vmem:[#allocation5 + $0x28] sm:$0xff] %vm4242_vm3, %v1500_v47 }
 0x451   : > { %v1490_v25 = vpop.f32.mrf.mxu2 }
 0x452   : > { %v1491_v27 = vadd.f32 %v1490_v25, %v1461_v61 }
 0x454   : > { %v1501_v9 = vadd.f32 %v1491_v27, %v1387_v50 }
 0x456   : > { %1509 = vst.msk [vmem:[#allocation5 + $0x30] sm:$0xff] %vm4245_vm5, %v1501_v9 }
 0x459   : > { %v1492_v12 = vpop.f32.mrf.mxu2 }
 0x45a   : > { %v1493_v30 = vadd.f32 %v1492_v12, %v1463_v10 }
 0x45c   : > { %v1502_v32 = vadd.f32 %v1493_v30, %v1388_v56 }
 0x45e   : > { %1510 = vst.msk [vmem:[#allocation5 + $0x38] sm:$0xff] %vm4246_vm2, %v1502_v32  ;;  %v1592_v32 = vld [vmem:[#allocation5 + $0x28] sm:$0xff] }
 0x46e   : > { %v1644_v15 = vpop.permute.xlu2 %1643 }
 0x46f   : > { %2240 = vrcp.f32 %v1644_v15  ;;  %v1702_v48 = vand.u32 2147483648, %v1644_v15  ;;  %v1700_v2 = vand.u32 2147483647, %v1644_v15  ;;  %vm1696_vm6 = vweird.f32 %v1644_v15 }
 0x471   : > { %v1703_v6 = vor.u32 1.1754944e-38, %v1702_v48  ;;  %vm1701_vm14 = vcmp.eq.f32.partialorder %v1700_v2, 8.507059e+37 }
 0x475   : > { %v2241_v41 = vpop.eup %2240 }
 0x476   : > { %v1692_v44 = vmul.f32 %v2241_v41, %v1644_v15  ;;  %vm1697_vm10 = vweird.f32 %v2241_v41 }
 0x477   : > { %vm1698_vm1 = vmor %vm1696_vm6, %vm1697_vm10 }
 0x478   : > { %v1693_v0 = vsub.f32 1.0, %v1692_v44 }
 0x47a   : > { %v1694_v42 = vmul.f32 %v2241_v41, %v1693_v0 }
 0x47c   : > { %v1695_v19 = vadd.f32 %v2241_v41, %v1694_v42 }
 0x47e   : > { %v1639_v53 = vpop.permute.xlu0 %1638  ;;  %v1699_v20 = vsel %vm1698_vm1, %v2241_v41, %v1695_v19 }
 0x47f   : > { %2242 = vrcp.f32 %v1639_v53  ;;  %v1704_v45 = vsel %vm1701_vm14, %v1703_v6, %v1699_v20  ;;  %v1687_v35 = vand.u32 2147483648, %v1639_v53  ;;  %v1685_v57 = vand.u32 2147483647, %v1639_v53 }
 0x480   : > { %v3957_v14 = vmul.f32 %v1704_v45, %v1588_v28  ;;  %vm1681_vm13 = vweird.f32 %v1639_v53 }
 0x481   : > { %v1688_v34 = vor.u32 1.1754944e-38, %v1687_v35  ;;  %vm1686_vm11 = vcmp.eq.f32.partialorder %v1685_v57, 8.507059e+37 }
 0x482   : > { %v1844_v5 = vmul.f32 %v3957_v14, %v3957_v14  ;;  %1797 = vst.msk [vmem:[#allocation2 + $0x8] sm:$0xff] %vm4243_vm9, %v3957_v14  ;;  %vm4249_vm9 = vmmov %vm4244_vm0 }
 0x484   : > { %v1854_v16 = vsel %vm4244_vm0, %v1844_v5, 0.0 }
 0x485   : > { %v2243_v22 = vpop.eup %2242  ;;  %1855 = vadd.xlane.f32.xlu0 %v1854_v16 }
 0x486   : > { %v1677_v37 = vmul.f32 %v2243_v22, %v1639_v53  ;;  %vm1682_vm15 = vweird.f32 %v2243_v22 }
 0x487   : > { %vm1683_vm4 = vmor %vm1681_vm13, %vm1682_vm15 }
 0x488   : > { %v1678_v7 = vsub.f32 1.0, %v1677_v37  ;;  %vm4250_vm15 = vmmov %vm4246_vm2 }
 0x48a   : > { %v1679_v63 = vmul.f32 %v2243_v22, %v1678_v7  ;;  %v1591_v7 = vld [vmem:[#allocation5 + $0x20] sm:$0xff] }
 0x48c   : > { %v1680_v11 = vadd.f32 %v2243_v22, %v1679_v63 }
 0x48e   : > { %v1649_v52 = vpop.permute.xlu0 %1648  ;;  %v1684_v36 = vsel %vm1683_vm4, %v2243_v22, %v1680_v11 }
 0x48f   : > { %2244 = vrcp.f32 %v1649_v52  ;;  %v1689_v33 = vsel %vm1686_vm11, %v1688_v34, %v1684_v36  ;;  %v1717_v29 = vand.u32 2147483648, %v1649_v52  ;;  %v1715_v3 = vand.u32 2147483647, %v1649_v52  ;;  %vm4251_vm11 = vmmov %vm4246_vm2 }
 0x490   : > { %v3966_v23 = vmul.f32 %v1689_v33, %v1587_v54  ;;  %vm1711_vm6 = vweird.f32 %v1649_v52 }
 0x491   : > { %v1718_v59 = vor.u32 1.1754944e-38, %v1717_v29  ;;  %vm1716_vm14 = vcmp.eq.f32.partialorder %v1715_v3, 8.507059e+37 }
 0x492   : > { %v1843_v43 = vmul.f32 %v3966_v23, %v3966_v23  ;;  %1796 = vst.msk [vmem:[#allocation2] sm:$0xff] %vm4247_vm8, %v3966_v23  ;;  %v1804_v25 = vpack.c.bf16 %v3957_v14, %v3966_v23 }
 0x494   : > { %v1851_v51 = vsel %vm4248_vm7, %v1843_v43, 0.0 }
 0x495   : > { %v2245_v40 = vpop.eup %2244  ;;  %1852 = vadd.xlane.f32.xlu1 %v1851_v51 }
 0x496   : > { %v1707_v46 = vmul.f32 %v2245_v40, %v1649_v52  ;;  %v1654_v55 = vpop.permute.xlu0 %1653  ;;  %vm1712_vm10 = vweird.f32 %v2245_v40 }
 0x497   : > { %2246 = vrcp.f32 %v1654_v55  ;;  %vm1713_vm1 = vmor %vm1711_vm6, %vm1712_vm10  ;;  %v1732_v17 = vand.u32 2147483648, %v1654_v55  ;;  %v1730_v44 = vand.u32 2147483647, %v1654_v55  ;;  %vm1726_vm0 = vweird.f32 %v1654_v55 }
 0x498   : > { %v1708_v62 = vsub.f32 1.0, %v1707_v46 }
 0x499   : > { %v1733_v2 = vor.u32 1.1754944e-38, %v1732_v17  ;;  %vm1731_vm13 = vcmp.eq.f32.partialorder %v1730_v44, 8.507059e+37 }
 0x49a   : > { %v1709_v31 = vmul.f32 %v2245_v40, %v1708_v62 }
 0x49c   : > { %v1710_v1 = vadd.f32 %v2245_v40, %v1709_v31 }
 0x49d   : > { %v2247_v39 = vpop.eup %2246 }
 0x49e   : > { %v1722_v13 = vmul.f32 %v2247_v39, %v1654_v55  ;;  %v1659_v38 = vpop.permute.xlu0 %1658  ;;  %v1714_v15 = vsel %vm1713_vm1, %v2245_v40, %v1710_v1  ;;  %vm1727_vm3 = vweird.f32 %v2247_v39  ;;  %vm4252_vm1 = vmmov %vm4248_vm7 }
 0x49f   : > { %2248 = vrcp.f32 %v1659_v38  ;;  %v1719_v18 = vsel %vm1716_vm14, %v1718_v59, %v1714_v15  ;;  %vm1728_vm5 = vmor %vm1726_vm0, %vm1727_vm3  ;;  %v1747_v20 = vand.u32 2147483648, %v1659_v38  ;;  %v1745_v45 = vand.u32 2147483647, %v1659_v38 }
 0x4a0   : > { %v1723_v60 = vsub.f32 1.0, %v1722_v13  ;;  %v3974_v21 = vmul.f32 %v1719_v18, %v1589_v24  ;;  %vm1741_vm2 = vweird.f32 %v1659_v38  ;;  %v1593_v13 = vld [vmem:[#allocation5 + $0x30] sm:$0xff] }
 0x4a1   : > { %v1748_v22 = vor.u32 1.1754944e-38, %v1747_v20  ;;  %vm1746_vm10 = vcmp.eq.f32.partialorder %v1745_v45, 8.507059e+37 }
 0x4a2   : > { %v1724_v41 = vmul.f32 %v2247_v39, %v1723_v60  ;;  %v1845_v58 = vmul.f32 %v3974_v21, %v3974_v21  ;;  %1798 = vst.msk [vmem:[#allocation2 + $0x10] sm:$0xff] %vm4249_vm9, %v3974_v21  ;;  %vm4253_vm9 = vmmov %vm4252_vm1 }
 0x4a4   : > { %v1725_v0 = vadd.f32 %v2247_v39, %v1724_v41  ;;  %v1857_v48 = vsel %vm4250_vm15, %v1845_v58, 0.0  ;;  %vm4254_vm15 = vmmov %vm4252_vm1 }
 0x4a5   : > { %v2249_v42 = vpop.eup %2248  ;;  %1858 = vadd.xlane.f32.xlu2 %v1857_v48 }
 0x4a6   : > { %v1737_v19 = vmul.f32 %v2249_v42, %v1659_v38  ;;  %v1664_v49 = vpop.permute.xlu0 %1663  ;;  %v1729_v4 = vsel %vm1728_vm5, %v2247_v39, %v1725_v0  ;;  %vm1742_vm4 = vweird.f32 %v2249_v42 }
 0x4a7   : > { %2250 = vrcp.f32 %v1664_v49  ;;  %v1734_v6 = vsel %vm1731_vm13, %v1733_v2, %v1729_v4  ;;  %vm1743_vm8 = vmor %vm1741_vm2, %vm1742_vm4  ;;  %v1762_v11 = vand.u32 2147483648, %v1664_v49  ;;  %v1760_v10 = vand.u32 2147483647, %v1664_v49 }
 0x4a8   : > { %v1738_v8 = vsub.f32 1.0, %v1737_v19  ;;  %v3981_v53 = vmul.f32 %v1734_v6, %v1590_v26  ;;  %vm1756_vm14 = vweird.f32 %v1664_v49 }
 0x4a9   : > { %v1763_v34 = vor.u32 1.1754944e-38, %v1762_v11  ;;  %vm1761_vm0 = vcmp.eq.f32.partialorder %v1760_v10, 8.507059e+37  ;;  %v1914_v11 = vld [vmem:[#allocation2 + $0x8] sm:$0xff] (%p1908_p5)  ;;  %v1915_v10 = vld [vmem:[#allocation2 + $0x10] sm:$0xff] (%p1908_p5) }
 0x4aa   : > { %v1739_v28 = vmul.f32 %v2249_v42, %v1738_v8  ;;  %1799 = vst.msk [vmem:[#allocation2 + $0x18] sm:$0xff] %vm4251_vm11, %v3981_v53  ;;  %v1846_v47 = vmul.f32 %v3981_v53, %v3981_v53  ;;  %vm4255_vm11 = vmmov %vm4252_vm1  ;;  %v1805_v1 = vpack.c.bf16 %v3981_v53, %v3974_v21 }
 0x4ac   : > { %v1740_v5 = vadd.f32 %v2249_v42, %v1739_v28  ;;  %v1860_v50 = vsel %vm4248_vm7, %v1846_v47, 0.0  ;;  %vm4256_vm7 = vmmov %vm4252_vm1 }
 0x4ad   : > { %v2251_v61 = vpop.eup %2250  ;;  %1861 = vadd.xlane.f32.xlu2 %v1860_v50 }
 0x4ae   : > { %v1752_v16 = vmul.f32 %v2251_v61, %v1664_v49  ;;  %v1669_v27 = vpop.permute.xlu0 %1668  ;;  %v1744_v37 = vsel %vm1743_vm8, %v2249_v42, %v1740_v5  ;;  %1808 = vxpose.xlu0.c.b16.start [1/4] (short) (narrow) %v1804_v25, 32  ;;  %vm1757_vm6 = vweird.f32 %v2251_v61  ;;  %v1594_v42 = vld [vmem:[#allocation5 + $0x38] sm:$0xff] }
 0x4af   : > { %2252 = vrcp.f32 %v1669_v27  ;;  %v1749_v63 = vsel %vm1746_vm10, %v1748_v22, %v1744_v37  ;;  %vm1758_vm3 = vmor %vm1756_vm14, %vm1757_vm6  ;;  %v1777_v43 = vand.u32 2147483648, %v1669_v27  ;;  %v1775_v46 = vand.u32 2147483647, %v1669_v27 }
 0x4b0   : > { %v1753_v9 = vsub.f32 1.0, %v1752_v16  ;;  %v3990_v35 = vmul.f32 %v1749_v63, %v1591_v7  ;;  %vm1771_vm13 = vweird.f32 %v1669_v27  ;;  %vm4257_vm6 = vmmov %vm4252_vm1 }
 0x4b1   : > { %v1778_v29 = vor.u32 1.1754944e-38, %v1777_v43  ;;  %vm1776_vm2 = vcmp.eq.f32.partialorder %v1775_v46, 8.507059e+37 }
 0x4b2   : > { %v1754_v57 = vmul.f32 %v2251_v61, %v1753_v9  ;;  %1800 = vst.msk [vmem:[#allocation2 + $0x20] sm:$0xff] %vm4252_vm1, %v3990_v35  ;;  %v1847_v14 = vmul.f32 %v3990_v35, %v3990_v35 }
 0x4b4   : > { %v1755_v12 = vadd.f32 %v2251_v61, %v1754_v57  ;;  %v1863_v30 = vsel %vm4253_vm9, %v1847_v14, 0.0  ;;  %v1913_v57 = vld [vmem:[#allocation2] sm:$0xff] (%p1908_p5)  ;;  %v1916_v14 = vld [vmem:[#allocation2 + $0x18] sm:$0xff] (%p1908_p5) }
 0x4b5   : > { %v2253_v56 = vpop.eup %2252  ;;  %1864 = vadd.xlane.f32.xlu2 %v1863_v30 }
 0x4b6   : > { %v1767_v52 = vmul.f32 %v2253_v56, %v1669_v27  ;;  %v1674_v36 = vpop.permute.xlu0 %1673  ;;  %v1759_v54 = vsel %vm1758_vm3, %v2251_v61, %v1755_v12  ;;  %vm1772_vm5 = vweird.f32 %v2253_v56  ;;  %vm4258_vm3 = vmmov %vm4257_vm6 }
 0x4b7   : > { %2254 = vrcp.f32 %v1674_v36  ;;  %v1764_v23 = vsel %vm1761_vm0, %v1763_v34, %v1759_v54  ;;  %vm1773_vm4 = vmor %vm1771_vm13, %vm1772_vm5  ;;  %v1792_v24 = vand.u32 2147483648, %v1674_v36  ;;  %v1790_v41 = vand.u32 2147483647, %v1674_v36 }
 0x4b8   : > { %v1768_v33 = vsub.f32 1.0, %v1767_v52  ;;  %v1765_v40 = vmul.f32 %v1764_v23, %v1592_v32  ;;  %vm1786_vm10 = vweird.f32 %v1674_v36  ;;  %vm4259_vm9 = vmmov %vm4258_vm3  ;;  %vm1838_vm0 = vcmask 519168  }
 0x4b9   : > { %v1793_v58 = vor.u32 1.1754944e-38, %v1792_v24  ;;  %vm1791_vm14 = vcmp.eq.f32.partialorder %v1790_v41, 8.507059e+37  ;;  %vm4260_vm5 = vcmask (%p1908_p5), 261120   ;;  %v1917_v12 = vld [vmem:[#allocation2 + $0x20] sm:$0xff] (%p1908_p5) }
 0x4ba   : > { %v1769_v51 = vmul.f32 %v2253_v56, %v1768_v33  ;;  %1801 = vst.msk [vmem:[#allocation2 + $0x28] sm:$0xff] %vm4254_vm15, %v1765_v40  ;;  %v1848_v55 = vmul.f32 %v1765_v40, %v1765_v40  ;;  %v1806_v4 = vpack.c.bf16 %v1765_v40, %v3990_v35  ;;  %vm4261_vm15 = vmmov (%p1908_p5), %vm4260_vm5 }
 0x4bb   : > { %1921 = vst.msk [vmem:[%s4053_s2] sm:$0xff] (%p1908_p5), %vm4260_vm5, %v1913_v57  ;;  %vm4262_vm13 = vmmov (%p1908_p5), %vm4260_vm5 }
 0x4bc   : > { %v1770_v62 = vadd.f32 %v2253_v56, %v1769_v51  ;;  %v1866_v3 = vsel %vm4255_vm11, %v1848_v55, 0.0  ;;  %1922 = vst.msk [vmem:[%s4053_s2 + $0x8] sm:$0xff] (%p1908_p5), %vm4261_vm15, %v1914_v11 }
 0x4bd   : > { %v2255_v31 = vpop.eup %2254  ;;  %1867 = vadd.xlane.f32.xlu2 %v1866_v3  ;;  %1923 = vst.msk [vmem:[%s4053_s2 + $0x10] sm:$0xff] (%p1908_p5), %vm4262_vm13, %v1915_v10 }
 0x4be   : > { %v1782_v39 = vmul.f32 %v2255_v31, %v1674_v36  ;;  %v1774_v59 = vsel %vm1773_vm4, %v2253_v56, %v1770_v62  ;;  %1809 = vxpose.xlu0.c.b16.cont [2/4] (short) (narrow) %v1805_v1, 32  ;;  %vm1787_vm8 = vweird.f32 %v2255_v31  ;;  %vm4264_vm4 = vmmov (%p1908_p5), %vm4260_vm5 }
 0x4bf   : > { %v1779_v38 = vsel %vm1776_vm2, %v1778_v29, %v1774_v59  ;;  %vm1788_vm1 = vmor %vm1786_vm10, %vm1787_vm8  ;;  %1925 = vst.msk [vmem:[%s4053_s2 + $0x20] sm:$0xff] (%p1908_p5), %vm4264_vm4, %v1917_v12 }
 0x4c0   : > { %v1783_v15 = vsub.f32 1.0, %v1782_v39  ;;  %v1780_v60 = vmul.f32 %v1779_v38, %v1593_v13  ;;  %vm4265_vm11 = vmmov (%p1908_p5), %vm4264_vm4 }
 0x4c1   : > { %v1918_v56 = vld [vmem:[#allocation2 + $0x28] sm:$0xff] (%p1908_p5)  ;;  %vm4266_vm2 = vmmov (%p1908_p5), %vm4264_vm4 }
 0x4c2   : > { %v1784_v18 = vmul.f32 %v2255_v31, %v1783_v15  ;;  %1802 = vst.msk [vmem:[#allocation2 + $0x30] sm:$0xff] %vm4256_vm7, %v1780_v60  ;;  %v1849_v17 = vmul.f32 %v1780_v60, %v1780_v60  ;;  %vm4267_vm8 = vmmov (%p1908_p5), %vm4266_vm2 }
 0x4c3   : > { %1926 = vst.msk [vmem:[%s4053_s2 + $0x28] sm:$0xff] (%p1908_p5), %vm4265_vm11, %v1918_v56 }
 0x4c4   : > { %v1785_v44 = vadd.f32 %v2255_v31, %v1784_v18  ;;  %v1869_v21 = vsel %vm4257_vm6, %v1849_v17, 0.0 }
 0x4c5   : > { %1870 = vadd.xlane.f32.xlu1 %v1869_v21 }
 0x4c6   : > { %v1789_v0 = vsel %vm1788_vm1, %v2255_v31, %v1785_v44 }
 0x4c7   : > { %v1794_v48 = vsel %vm1791_vm14, %v1793_v58, %v1789_v0 }
 0x4c8   : > { %v1795_v2 = vmul.f32 %v1794_v48, %v1594_v42 }
 0x4c9   : > { %v1919_v30 = vld [vmem:[#allocation2 + $0x30] sm:$0xff] (%p1908_p5) }
 0x4ca   : > { %1803 = vst.msk [vmem:[#allocation2 + $0x38] sm:$0xff] %vm4258_vm3, %v1795_v2  ;;  %v1850_v19 = vmul.f32 %v1795_v2, %v1795_v2  ;;  %v1807_v8 = vpack.c.bf16 %v1795_v2, %v1780_v60 }
 0x4cb   : > { %1927 = vst.msk [vmem:[%s4053_s2 + $0x30] sm:$0xff] (%p1908_p5), %vm4266_vm2, %v1919_v30 }
 0x4cc   : > { %v1872_v49 = vsel %vm4259_vm9, %v1850_v19, 0.0 }
 0x4cd   : > { %1873 = vadd.xlane.f32.xlu2 %v1872_v49 }
 0x4ce   : > { %1810 = vxpose.xlu0.c.b16.cont [3/4] (short) (narrow) %v1806_v4, 32 }
 0x4d1   : > { %v1920_v34 = vld [vmem:[#allocation2 + $0x38] sm:$0xff] (%p1908_p5) }
 0x4d2   : > { %1928 = vst.msk [vmem:[%s4053_s2 + $0x38] sm:$0xff] (%p1908_p5), %vm4267_vm8, %v1920_v34 }
 0x4de   : > { %1811 = vxpose.xlu0.c.b16.end [4/4] (short) (narrow) %v1807_v8, 32 }
 0x4f8   : > { %v1856_v6 = vpop.xlane.xlu0 %1855 }
 0x508   : > { %v1853_v26 = vpop.xlane.xlu1 %1852 }
 0x509   : > { %1875 = vxpose.xlu1.b32.start [1/8] (short) (narrow) %v1853_v26, 8 }
 0x511   : > { %1876 = vxpose.xlu1.b32.cont [2/8] (short) (narrow) %v1856_v6, 8 }
 0x518   : > { %v1859_v53 = vpop.xlane.xlu2 %1858 }
 0x519   : > { %1877 = vxpose.xlu1.b32.cont [3/8] (short) (narrow) %v1859_v53, 8 }
 0x520   : > { %v1862_v28 = vpop.xlane.xlu2 %1861 }
 0x521   : > { %1878 = vxpose.xlu1.b32.cont [4/8] (short) (narrow) %v1862_v28, 8 }
 0x528   : > { %v1865_v20 = vpop.xlane.xlu2 %1864 }
 0x529   : > { %1879 = vxpose.xlu1.b32.cont [5/8] (short) (narrow) %v1865_v20, 8 }
 0x530   : > { %v1868_v45 = vpop.xlane.xlu2 %1867 }
 0x531   : > { %1880 = vxpose.xlu1.b32.cont [6/8] (short) (narrow) %v1868_v45, 8 }
 0x538   : > { %v1871_v47 = vpop.xlane.xlu1 %1870 }
 0x539   : > { %1881 = vxpose.xlu1.b32.cont [7/8] (short) (narrow) %v1871_v47, 8 }
 0x540   : > { %v1874_v5 = vpop.xlane.xlu2 %1873 }
 0x541   : > { %1882 = vxpose.xlu1.b32.end [8/8] (short) (narrow) %v1874_v5, 8 }
 0x55a   : > { %v1816_v61 = vpop.trf.xlu0 }
 0x55b   : > { %v1826_v50 = vunpack.c.l.b16 %v1816_v61  ;;  %v1827_v25 = vunpack.c.h.b16 %v1816_v61 }
 0x55d   : > { %v1830_v22 = vpack.c.b16 %v1826_v50, %v1826_v50  ;;  %v1831_v16 = vpack.c.b16 %v1827_v25, %v1827_v25 }
 0x55f   : > { %1839 = vst.msk [vmem:[#allocation3] sm:$0xf] %vm1838_vm0, %v1830_v22 }
 0x560   : > { %1840 = vst.msk [vmem:[#allocation3 + $0x4] sm:$0xf] %vm1838_vm0, %v1831_v16 }
 0x56a   : > { %v1817_v27 = vpop.trf.xlu0 }
 0x56b   : > { %v1828_v37 = vunpack.c.l.b16 %v1817_v27  ;;  %v1829_v9 = vunpack.c.h.b16 %v1817_v27 }
 0x56d   : > { %v1832_v7 = vpack.c.b16 %v1828_v37, %v1828_v37  ;;  %v1833_v63 = vpack.c.b16 %v1829_v9, %v1829_v9 }
 0x56f   : > { %1841 = vst.msk [vmem:[#allocation3 + $0x8] sm:$0xf] %vm1838_vm0, %v1832_v7 }
 0x570   : > { %1842 = vst.msk [vmem:[#allocation3 + $0xc] sm:$0xf] %vm1838_vm0, %v1833_v63 }
 0x5aa   : > { %1912 = sbr.rel (!%p1908_p5) target bundleno = 1456 (0x5b0), region = 44 }
 0x5ad   : > { %v1891_v35 = vpop.trf.xlu1 }
 0x5ae   : > { %1907 = vst.msk [vmem:[#allocation4] sm:$0x1] %vm340_vm12, %v1891_v35  ;;  %vm4263_vm12 = vmmov (%p1908_p5), %vm4260_vm5 }
 0x5af   : > { %1924 = vst.msk [vmem:[%s4053_s2 + $0x18] sm:$0xff] %vm4263_vm12, %v1916_v14 }
 0x5b0 PF: > { %s12_s11 = sadd.s32 1, %s2278_s11   ;;  %s4268_s9 = smov %s2274_s10 }
 0x5b1   : > { %p9_p6 = scmp.ge.s32.totalorder %s12_s11, 66   ;;  %s4269_s10 = smov %s4271_s12 }
 0x5b3   :  { %11 = sbr.rel (!%p9_p6) target bundleno = 2 (0x2), region = 77 }

</bundles_post_ra>
